<compile_context>
chip_gen: v6e
topology: v6e:2x2x1
jax: 0.10.0
libtpu: 0.0.40
codegen_flags: <defaults>
</compile_context>

<pallas_src>
import functools

import jax
import jax.numpy as jnp
from jax.experimental import pallas as pl
from jax.experimental.pallas import tpu as pltpu


def _elu(v):
    # PyTorch ELU with alpha=1.  exp(x)-1 (vs expm1) keeps the lowering on the
    # plain EUP exp op; absolute error near 0 is ~1e-7, well inside tolerance.
    return jnp.where(v > 0, v, jnp.exp(v) - 1.0)


def _fused_cnn_kernel(x_ref, w1_ref, b1_ref, w2_ref, b2_ref, w3_ref, b3_ref,
                      o_ref, *, N, K, K3, pad, L1, L2, L3):
    f32 = jnp.float32

    def pad_lanes(v, p):
        # Zero "same" padding along the length (lane) axis, built in VMEM.
        if p == 0:
            return v
        z = jnp.zeros((v.shape[0], p), f32)
        return jnp.concatenate([z, v, z], axis=1)

    def im2col(v, taps, l_out):
        # (C, L_pad) -> (taps*C, l_out); row index = k*C + c, which matches the
        # (C_out, K, C_in) -> (C_out, K*C_in) weight flattening in the wrapper.
        return jnp.concatenate([v[:, k:k + l_out] for k in range(taps)], axis=0)

    # ---- conv1 (C_in -> C1, kernel K, "same" padding) + ELU -----------------
    cols1 = jnp.concatenate(
        [im2col(pad_lanes(x_ref[b].astype(f32), pad), K, L1) for b in range(N)],
        axis=1)                                                   # (K*C_in, N*L1)
    h1 = _elu(jnp.dot(w1_ref[...], cols1,
                      preferred_element_type=f32) + b1_ref[...])  # (C1, N*L1)
    # TODO(synk): Dropout is the identity at inference time; no RNG mask applied.

    # ---- conv2 (C1 -> C2, kernel K, "same" padding) + ELU -------------------
    cols2 = jnp.concatenate(
        [im2col(pad_lanes(h1[:, b * L1:(b + 1) * L1], pad), K, L2)
         for b in range(N)], axis=1)                              # (K*C1, N*L2)
    h2 = _elu(jnp.dot(w2_ref[...], cols2,
                      preferred_element_type=f32) + b2_ref[...])  # (C2, N*L2)

    # ---- conv3 (C2 -> 1, kernel K3, no padding, no activation) --------------
    cols3 = jnp.concatenate(
        [im2col(h2[:, b * L2:(b + 1) * L2], K3, L3) for b in range(N)],
        axis=1)                                                   # (K3*C2, N*L3)
    y = jnp.dot(w3_ref[...], cols3,
                preferred_element_type=f32) + b3_ref[...]         # (1, N*L3)

    # Store lane-dense (N, L3): the length axis stays on lanes.
    o_ref[...] = jnp.concatenate(
        [y[:, b * L3:(b + 1) * L3] for b in range(N)], axis=0).astype(o_ref.dtype)


@functools.partial(jax.jit, static_argnames=("stride", "padding"))
def cnn2layers_forward(params, x_ncl, *, stride, padding):
    """params: [(w1,b1),(w2,b2),(w3,b3)] in PyTorch Conv1d layout (C_out,C_in,K)."""
    if stride != 1:
        # TODO(synk): stride > 1 would need strided lane slicing (pl.ds stride=)
        # in the im2col; not wired up since this module instance uses stride=1.
        raise NotImplementedError("fused CNN2Layers kernel supports stride == 1")

    (w1, b1), (w2, b2), (w3, b3) = params
    N, C_in, L = x_ncl.shape
    C1, _, K = w1.shape
    C2, _, _ = w2.shape
    C3, _, K3 = w3.shape
    assert C3 == 1
    pad = padding
    L1 = L + 2 * pad - K + 1
    L2 = L1 + 2 * pad - K + 1
    L3 = L2 - K3 + 1

    # Weight prep (tiny, fuses under jit): (C_out, C_in, K) -> (C_out, K*C_in)
    # so that the flat contraction index k*C_in + c matches the kernel's im2col.
    w1f = jnp.transpose(w1, (0, 2, 1)).reshape(C1, K * C_in)
    w2f = jnp.transpose(w2, (0, 2, 1)).reshape(C2, K * C1)
    w3f = jnp.transpose(w3, (0, 2, 1)).reshape(1, K3 * C2)
    b1c, b2c, b3c = b1.reshape(C1, 1), b2.reshape(C2, 1), b3.reshape(1, 1)

    kernel = functools.partial(
        _fused_cnn_kernel, N=N, K=K, K3=K3, pad=pad, L1=L1, L2=L2, L3=L3)

    out = pl.pallas_call(
        kernel,
        out_shape=jax.ShapeDtypeStruct((N, L3), x_ncl.dtype),
        # No grid: a single invocation with every (tiny) operand resident in VMEM.
        in_specs=[pl.BlockSpec(memory_space=pltpu.MemorySpace.VMEM)
                  for _ in range(7)],
        out_specs=pl.BlockSpec(memory_space=pltpu.MemorySpace.VMEM),
    )(x_ncl, w1f, b1c, w2f, b2c, w3f, b3c)

    # torch.squeeze semantics (also drops the batch dim when N == 1).
    return jnp.squeeze(out)


# ----------------------------------------------------------------------------
# Pure-JAX reference (lax conv) for the correctness check.
# ----------------------------------------------------------------------------
def _ref_conv1d(x_ncl, w, b, stride, padding):
    out = jax.lax.conv_general_dilated(
        x_ncl, w, window_strides=(stride,), padding=[(padding, padding)],
        dimension_numbers=("NCH", "OIH", "NCH"))
    return out + b[None, :, None]


def _ref_forward(params, x_ncl, *, stride, padding):
    (w1, b1), (w2, b2), (w3, b3) = params
    h = jax.nn.elu(_ref_conv1d(x_ncl, w1, b1, stride, padding))
    h = jax.nn.elu(_ref_conv1d(h, w2, b2, stride, padding))
    h = _ref_conv1d(h, w3, b3, 1, 0)
    return jnp.squeeze(h)


# ----------------------------------------------------------------------------
if __name__ == "__main__":
    # Module hyper-parameters (small, consistent with the PyTorch __init__).
    in_channels = 4
    feature_channels = 32
    kernel_size = 5
    stride = 1
    padding = 2
    batch_size = 2
    seq_len = 64

    key = jax.random.PRNGKey(0)
    k1, k2, k3, k4, k5, k6, kx = jax.random.split(key, 7)

    fc2 = feature_channels // 2
    params = [
        (0.1 * jax.random.normal(k1, (feature_channels, in_channels, kernel_size), jnp.float32),
         0.1 * jax.random.normal(k2, (feature_channels,), jnp.float32)),
        (0.1 * jax.random.normal(k3, (fc2, feature_channels, kernel_size), jnp.float32),
         0.1 * jax.random.normal(k4, (fc2,), jnp.float32)),
        (0.1 * jax.random.normal(k5, (1, fc2, 31), jnp.float32),
         0.1 * jax.random.normal(k6, (1,), jnp.float32)),
    ]

    x = jax.random.normal(kx, (batch_size, in_channels, seq_len), jnp.float32)

    out = cnn2layers_forward(params, x, stride=stride, padding=padding)
    out = jax.block_until_ready(out)

    ref = _ref_forward(params, x, stride=stride, padding=padding)
    assert out.shape == ref.shape, (out.shape, ref.shape)
    max_err = float(jnp.max(jnp.abs(out - ref)))
    assert jnp.allclose(out, ref, atol=1e-4, rtol=1e-4), max_err

    print("KERNEL_OK")
</pallas_src>

<mosaic_0001>
module attributes {stable_mosaic.version = 11 : i64} {
  func.func @_fused_cnn_kernel(%arg0: memref<2x4x64xf32, #tpu.memory_space<vmem>>, %arg1: memref<32x20xf32, #tpu.memory_space<vmem>>, %arg2: memref<32x1xf32, #tpu.memory_space<vmem>>, %arg3: memref<16x160xf32, #tpu.memory_space<vmem>>, %arg4: memref<16x1xf32, #tpu.memory_space<vmem>>, %arg5: memref<1x496xf32, #tpu.memory_space<vmem>>, %arg6: memref<1x1xf32, #tpu.memory_space<vmem>>, %arg7: memref<2x34xf32, #tpu.memory_space<vmem>>) attributes {dimension_semantics = [], scalar_prefetch = 0 : i64, scratch_operands = 0 : i64, tpu.core_type = #tpu.core_type<tc>} {
    %c0 = arith.constant 0 : index
    %c0_0 = arith.constant 0 : index
    %c0_1 = arith.constant 0 : index
    %0 = vector.load %arg0[%c0, %c0_0, %c0_1] : memref<2x4x64xf32, #tpu.memory_space<vmem>>, vector<1x4x64xf32>
    %1 = vector.shape_cast %0 : vector<1x4x64xf32> to vector<4x64xf32>
    %cst = arith.constant 0.000000e+00 : f32
    %2 = vector.broadcast %cst : f32 to vector<4x2xf32>
    %3 = tpu.concatenate %2, %1, %2 in 1 : vector<4x2xf32>, vector<4x64xf32>, vector<4x2xf32> -> vector<4x68xf32>
    %4 = vector.extract_strided_slice %3 {offsets = [0, 0], sizes = [4, 64], strides = [1, 1]} : vector<4x68xf32> to vector<4x64xf32>
    %5 = vector.extract_strided_slice %3 {offsets = [0, 1], sizes = [4, 64], strides = [1, 1]} : vector<4x68xf32> to vector<4x64xf32>
    %6 = vector.extract_strided_slice %3 {offsets = [0, 2], sizes = [4, 64], strides = [1, 1]} : vector<4x68xf32> to vector<4x64xf32>
    %7 = vector.extract_strided_slice %3 {offsets = [0, 3], sizes = [4, 64], strides = [1, 1]} : vector<4x68xf32> to vector<4x64xf32>
    %8 = vector.extract_strided_slice %3 {offsets = [0, 4], sizes = [4, 64], strides = [1, 1]} : vector<4x68xf32> to vector<4x64xf32>
    %9 = tpu.concatenate %4, %5, %6, %7, %8 in 0 : vector<4x64xf32>, vector<4x64xf32>, vector<4x64xf32>, vector<4x64xf32>, vector<4x64xf32> -> vector<20x64xf32>
    %c1 = arith.constant 1 : index
    %c0_2 = arith.constant 0 : index
    %c0_3 = arith.constant 0 : index
    %10 = vector.load %arg0[%c1, %c0_2, %c0_3] : memref<2x4x64xf32, #tpu.memory_space<vmem>>, vector<1x4x64xf32>
    %11 = vector.shape_cast %10 : vector<1x4x64xf32> to vector<4x64xf32>
    %cst_4 = arith.constant 0.000000e+00 : f32
    %12 = vector.broadcast %cst_4 : f32 to vector<4x2xf32>
    %13 = tpu.concatenate %12, %11, %12 in 1 : vector<4x2xf32>, vector<4x64xf32>, vector<4x2xf32> -> vector<4x68xf32>
    %14 = vector.extract_strided_slice %13 {offsets = [0, 0], sizes = [4, 64], strides = [1, 1]} : vector<4x68xf32> to vector<4x64xf32>
    %15 = vector.extract_strided_slice %13 {offsets = [0, 1], sizes = [4, 64], strides = [1, 1]} : vector<4x68xf32> to vector<4x64xf32>
    %16 = vector.extract_strided_slice %13 {offsets = [0, 2], sizes = [4, 64], strides = [1, 1]} : vector<4x68xf32> to vector<4x64xf32>
    %17 = vector.extract_strided_slice %13 {offsets = [0, 3], sizes = [4, 64], strides = [1, 1]} : vector<4x68xf32> to vector<4x64xf32>
    %18 = vector.extract_strided_slice %13 {offsets = [0, 4], sizes = [4, 64], strides = [1, 1]} : vector<4x68xf32> to vector<4x64xf32>
    %19 = tpu.concatenate %14, %15, %16, %17, %18 in 0 : vector<4x64xf32>, vector<4x64xf32>, vector<4x64xf32>, vector<4x64xf32>, vector<4x64xf32> -> vector<20x64xf32>
    %20 = tpu.concatenate %9, %19 in 1 : vector<20x64xf32>, vector<20x64xf32> -> vector<20x128xf32>
    %c0_5 = arith.constant 0 : index
    %c0_6 = arith.constant 0 : index
    %21 = vector.load %arg1[%c0_5, %c0_6] : memref<32x20xf32, #tpu.memory_space<vmem>>, vector<32x20xf32>
    %cst_7 = arith.constant dense<0.000000e+00> : vector<32x128xf32>
    %22 = tpu.matmul %21, %20, %cst_7 {dimension_numbers = #tpu.dot_dimension_numbers<[1], [0], [0], [1], [0, 0, 1, 1], [], []>} : vector<32x20xf32>, vector<20x128xf32>, vector<32x128xf32> -> vector<32x128xf32>
    %c0_8 = arith.constant 0 : index
    %c0_9 = arith.constant 0 : index
    %23 = vector.load %arg2[%c0_8, %c0_9] : memref<32x1xf32, #tpu.memory_space<vmem>>, vector<32x1xf32>
    %24 = vector.broadcast %23 : vector<32x1xf32> to vector<32x128xf32>
    %25 = arith.addf %22, %24 : vector<32x128xf32>
    %cst_10 = arith.constant 0.000000e+00 : f32
    %26 = vector.broadcast %cst_10 : f32 to vector<32x128xf32>
    %27 = arith.cmpf ogt, %25, %26 : vector<32x128xf32>
    %28 = math.exp %25 : vector<32x128xf32>
    %cst_11 = arith.constant 1.000000e+00 : f32
    %29 = vector.broadcast %cst_11 : f32 to vector<32x128xf32>
    %30 = arith.subf %28, %29 : vector<32x128xf32>
    %31 = arith.select %27, %25, %30 : vector<32x128xi1>, vector<32x128xf32>
    %32 = vector.extract_strided_slice %31 {offsets = [0, 0], sizes = [32, 64], strides = [1, 1]} : vector<32x128xf32> to vector<32x64xf32>
    %cst_12 = arith.constant 0.000000e+00 : f32
    %33 = vector.broadcast %cst_12 : f32 to vector<32x2xf32>
    %34 = tpu.concatenate %33, %32, %33 in 1 : vector<32x2xf32>, vector<32x64xf32>, vector<32x2xf32> -> vector<32x68xf32>
    %35 = vector.extract_strided_slice %34 {offsets = [0, 0], sizes = [32, 64], strides = [1, 1]} : vector<32x68xf32> to vector<32x64xf32>
    %36 = vector.extract_strided_slice %34 {offsets = [0, 1], sizes = [32, 64], strides = [1, 1]} : vector<32x68xf32> to vector<32x64xf32>
    %37 = vector.extract_strided_slice %34 {offsets = [0, 2], sizes = [32, 64], strides = [1, 1]} : vector<32x68xf32> to vector<32x64xf32>
    %38 = vector.extract_strided_slice %34 {offsets = [0, 3], sizes = [32, 64], strides = [1, 1]} : vector<32x68xf32> to vector<32x64xf32>
    %39 = vector.extract_strided_slice %34 {offsets = [0, 4], sizes = [32, 64], strides = [1, 1]} : vector<32x68xf32> to vector<32x64xf32>
    %40 = tpu.concatenate %35, %36, %37, %38, %39 in 0 : vector<32x64xf32>, vector<32x64xf32>, vector<32x64xf32>, vector<32x64xf32>, vector<32x64xf32> -> vector<160x64xf32>
    %41 = vector.extract_strided_slice %31 {offsets = [0, 64], sizes = [32, 64], strides = [1, 1]} : vector<32x128xf32> to vector<32x64xf32>
    %cst_13 = arith.constant 0.000000e+00 : f32
    %42 = vector.broadcast %cst_13 : f32 to vector<32x2xf32>
    %43 = tpu.concatenate %42, %41, %42 in 1 : vector<32x2xf32>, vector<32x64xf32>, vector<32x2xf32> -> vector<32x68xf32>
    %44 = vector.extract_strided_slice %43 {offsets = [0, 0], sizes = [32, 64], strides = [1, 1]} : vector<32x68xf32> to vector<32x64xf32>
    %45 = vector.extract_strided_slice %43 {offsets = [0, 1], sizes = [32, 64], strides = [1, 1]} : vector<32x68xf32> to vector<32x64xf32>
    %46 = vector.extract_strided_slice %43 {offsets = [0, 2], sizes = [32, 64], strides = [1, 1]} : vector<32x68xf32> to vector<32x64xf32>
    %47 = vector.extract_strided_slice %43 {offsets = [0, 3], sizes = [32, 64], strides = [1, 1]} : vector<32x68xf32> to vector<32x64xf32>
    %48 = vector.extract_strided_slice %43 {offsets = [0, 4], sizes = [32, 64], strides = [1, 1]} : vector<32x68xf32> to vector<32x64xf32>
    %49 = tpu.concatenate %44, %45, %46, %47, %48 in 0 : vector<32x64xf32>, vector<32x64xf32>, vector<32x64xf32>, vector<32x64xf32>, vector<32x64xf32> -> vector<160x64xf32>
    %50 = tpu.concatenate %40, %49 in 1 : vector<160x64xf32>, vector<160x64xf32> -> vector<160x128xf32>
    %c0_14 = arith.constant 0 : index
    %c0_15 = arith.constant 0 : index
    %51 = vector.load %arg3[%c0_14, %c0_15] : memref<16x160xf32, #tpu.memory_space<vmem>>, vector<16x160xf32>
    %cst_16 = arith.constant dense<0.000000e+00> : vector<16x128xf32>
    %52 = tpu.matmul %51, %50, %cst_16 {dimension_numbers = #tpu.dot_dimension_numbers<[1], [0], [0], [1], [0, 0, 1, 1], [], []>} : vector<16x160xf32>, vector<160x128xf32>, vector<16x128xf32> -> vector<16x128xf32>
    %c0_17 = arith.constant 0 : index
    %c0_18 = arith.constant 0 : index
    %53 = vector.load %arg4[%c0_17, %c0_18] : memref<16x1xf32, #tpu.memory_space<vmem>>, vector<16x1xf32>
    %54 = vector.broadcast %53 : vector<16x1xf32> to vector<16x128xf32>
    %55 = arith.addf %52, %54 : vector<16x128xf32>
    %cst_19 = arith.constant 0.000000e+00 : f32
    %56 = vector.broadcast %cst_19 : f32 to vector<16x128xf32>
    %57 = arith.cmpf ogt, %55, %56 : vector<16x128xf32>
    %58 = math.exp %55 : vector<16x128xf32>
    %cst_20 = arith.constant 1.000000e+00 : f32
    %59 = vector.broadcast %cst_20 : f32 to vector<16x128xf32>
    %60 = arith.subf %58, %59 : vector<16x128xf32>
    %61 = arith.select %57, %55, %60 : vector<16x128xi1>, vector<16x128xf32>
    %62 = vector.extract_strided_slice %61 {offsets = [0, 0], sizes = [16, 64], strides = [1, 1]} : vector<16x128xf32> to vector<16x64xf32>
    %63 = vector.extract_strided_slice %62 {offsets = [0, 0], sizes = [16, 34], strides = [1, 1]} : vector<16x64xf32> to vector<16x34xf32>
    %64 = vector.extract_strided_slice %62 {offsets = [0, 1], sizes = [16, 34], strides = [1, 1]} : vector<16x64xf32> to vector<16x34xf32>
    %65 = vector.extract_strided_slice %62 {offsets = [0, 2], sizes = [16, 34], strides = [1, 1]} : vector<16x64xf32> to vector<16x34xf32>
    %66 = vector.extract_strided_slice %62 {offsets = [0, 3], sizes = [16, 34], strides = [1, 1]} : vector<16x64xf32> to vector<16x34xf32>
    %67 = vector.extract_strided_slice %62 {offsets = [0, 4], sizes = [16, 34], strides = [1, 1]} : vector<16x64xf32> to vector<16x34xf32>
    %68 = vector.extract_strided_slice %62 {offsets = [0, 5], sizes = [16, 34], strides = [1, 1]} : vector<16x64xf32> to vector<16x34xf32>
    %69 = vector.extract_strided_slice %62 {offsets = [0, 6], sizes = [16, 34], strides = [1, 1]} : vector<16x64xf32> to vector<16x34xf32>
    %70 = vector.extract_strided_slice %62 {offsets = [0, 7], sizes = [16, 34], strides = [1, 1]} : vector<16x64xf32> to vector<16x34xf32>
    %71 = vector.extract_strided_slice %62 {offsets = [0, 8], sizes = [16, 34], strides = [1, 1]} : vector<16x64xf32> to vector<16x34xf32>
    %72 = vector.extract_strided_slice %62 {offsets = [0, 9], sizes = [16, 34], strides = [1, 1]} : vector<16x64xf32> to vector<16x34xf32>
    %73 = vector.extract_strided_slice %62 {offsets = [0, 10], sizes = [16, 34], strides = [1, 1]} : vector<16x64xf32> to vector<16x34xf32>
    %74 = vector.extract_strided_slice %62 {offsets = [0, 11], sizes = [16, 34], strides = [1, 1]} : vector<16x64xf32> to vector<16x34xf32>
    %75 = vector.extract_strided_slice %62 {offsets = [0, 12], sizes = [16, 34], strides = [1, 1]} : vector<16x64xf32> to vector<16x34xf32>
    %76 = vector.extract_strided_slice %62 {offsets = [0, 13], sizes = [16, 34], strides = [1, 1]} : vector<16x64xf32> to vector<16x34xf32>
    %77 = vector.extract_strided_slice %62 {offsets = [0, 14], sizes = [16, 34], strides = [1, 1]} : vector<16x64xf32> to vector<16x34xf32>
    %78 = vector.extract_strided_slice %62 {offsets = [0, 15], sizes = [16, 34], strides = [1, 1]} : vector<16x64xf32> to vector<16x34xf32>
    %79 = vector.extract_strided_slice %62 {offsets = [0, 16], sizes = [16, 34], strides = [1, 1]} : vector<16x64xf32> to vector<16x34xf32>
    %80 = vector.extract_strided_slice %62 {offsets = [0, 17], sizes = [16, 34], strides = [1, 1]} : vector<16x64xf32> to vector<16x34xf32>
    %81 = vector.extract_strided_slice %62 {offsets = [0, 18], sizes = [16, 34], strides = [1, 1]} : vector<16x64xf32> to vector<16x34xf32>
    %82 = vector.extract_strided_slice %62 {offsets = [0, 19], sizes = [16, 34], strides = [1, 1]} : vector<16x64xf32> to vector<16x34xf32>
    %83 = vector.extract_strided_slice %62 {offsets = [0, 20], sizes = [16, 34], strides = [1, 1]} : vector<16x64xf32> to vector<16x34xf32>
    %84 = vector.extract_strided_slice %62 {offsets = [0, 21], sizes = [16, 34], strides = [1, 1]} : vector<16x64xf32> to vector<16x34xf32>
    %85 = vector.extract_strided_slice %62 {offsets = [0, 22], sizes = [16, 34], strides = [1, 1]} : vector<16x64xf32> to vector<16x34xf32>
    %86 = vector.extract_strided_slice %62 {offsets = [0, 23], sizes = [16, 34], strides = [1, 1]} : vector<16x64xf32> to vector<16x34xf32>
    %87 = vector.extract_strided_slice %62 {offsets = [0, 24], sizes = [16, 34], strides = [1, 1]} : vector<16x64xf32> to vector<16x34xf32>
    %88 = vector.extract_strided_slice %62 {offsets = [0, 25], sizes = [16, 34], strides = [1, 1]} : vector<16x64xf32> to vector<16x34xf32>
    %89 = vector.extract_strided_slice %62 {offsets = [0, 26], sizes = [16, 34], strides = [1, 1]} : vector<16x64xf32> to vector<16x34xf32>
    %90 = vector.extract_strided_slice %62 {offsets = [0, 27], sizes = [16, 34], strides = [1, 1]} : vector<16x64xf32> to vector<16x34xf32>
    %91 = vector.extract_strided_slice %62 {offsets = [0, 28], sizes = [16, 34], strides = [1, 1]} : vector<16x64xf32> to vector<16x34xf32>
    %92 = vector.extract_strided_slice %62 {offsets = [0, 29], sizes = [16, 34], strides = [1, 1]} : vector<16x64xf32> to vector<16x34xf32>
    %93 = vector.extract_strided_slice %62 {offsets = [0, 30], sizes = [16, 34], strides = [1, 1]} : vector<16x64xf32> to vector<16x34xf32>
    %94 = tpu.concatenate %63, %64, %65, %66, %67, %68, %69, %70, %71, %72, %73, %74, %75, %76, %77, %78 in 0 : vector<16x34xf32>, vector<16x34xf32>, vector<16x34xf32>, vector<16x34xf32>, vector<16x34xf32>, vector<16x34xf32>, vector<16x34xf32>, vector<16x34xf32>, vector<16x34xf32>, vector<16x34xf32>, vector<16x34xf32>, vector<16x34xf32>, vector<16x34xf32>, vector<16x34xf32>, vector<16x34xf32>, vector<16x34xf32> -> vector<256x34xf32>
    %95 = tpu.concatenate %79, %80, %81, %82, %83, %84, %85, %86, %87, %88, %89, %90, %91, %92, %93 in 0 : vector<16x34xf32>, vector<16x34xf32>, vector<16x34xf32>, vector<16x34xf32>, vector<16x34xf32>, vector<16x34xf32>, vector<16x34xf32>, vector<16x34xf32>, vector<16x34xf32>, vector<16x34xf32>, vector<16x34xf32>, vector<16x34xf32>, vector<16x34xf32>, vector<16x34xf32>, vector<16x34xf32> -> vector<240x34xf32>
    %96 = tpu.concatenate %94, %95 in 0 : vector<256x34xf32>, vector<240x34xf32> -> vector<496x34xf32>
    %97 = vector.extract_strided_slice %61 {offsets = [0, 64], sizes = [16, 64], strides = [1, 1]} : vector<16x128xf32> to vector<16x64xf32>
    %98 = vector.extract_strided_slice %97 {offsets = [0, 0], sizes = [16, 34], strides = [1, 1]} : vector<16x64xf32> to vector<16x34xf32>
    %99 = vector.extract_strided_slice %97 {offsets = [0, 1], sizes = [16, 34], strides = [1, 1]} : vector<16x64xf32> to vector<16x34xf32>
    %100 = vector.extract_strided_slice %97 {offsets = [0, 2], sizes = [16, 34], strides = [1, 1]} : vector<16x64xf32> to vector<16x34xf32>
    %101 = vector.extract_strided_slice %97 {offsets = [0, 3], sizes = [16, 34], strides = [1, 1]} : vector<16x64xf32> to vector<16x34xf32>
    %102 = vector.extract_strided_slice %97 {offsets = [0, 4], sizes = [16, 34], strides = [1, 1]} : vector<16x64xf32> to vector<16x34xf32>
    %103 = vector.extract_strided_slice %97 {offsets = [0, 5], sizes = [16, 34], strides = [1, 1]} : vector<16x64xf32> to vector<16x34xf32>
    %104 = vector.extract_strided_slice %97 {offsets = [0, 6], sizes = [16, 34], strides = [1, 1]} : vector<16x64xf32> to vector<16x34xf32>
    %105 = vector.extract_strided_slice %97 {offsets = [0, 7], sizes = [16, 34], strides = [1, 1]} : vector<16x64xf32> to vector<16x34xf32>
    %106 = vector.extract_strided_slice %97 {offsets = [0, 8], sizes = [16, 34], strides = [1, 1]} : vector<16x64xf32> to vector<16x34xf32>
    %107 = vector.extract_strided_slice %97 {offsets = [0, 9], sizes = [16, 34], strides = [1, 1]} : vector<16x64xf32> to vector<16x34xf32>
    %108 = vector.extract_strided_slice %97 {offsets = [0, 10], sizes = [16, 34], strides = [1, 1]} : vector<16x64xf32> to vector<16x34xf32>
    %109 = vector.extract_strided_slice %97 {offsets = [0, 11], sizes = [16, 34], strides = [1, 1]} : vector<16x64xf32> to vector<16x34xf32>
    %110 = vector.extract_strided_slice %97 {offsets = [0, 12], sizes = [16, 34], strides = [1, 1]} : vector<16x64xf32> to vector<16x34xf32>
    %111 = vector.extract_strided_slice %97 {offsets = [0, 13], sizes = [16, 34], strides = [1, 1]} : vector<16x64xf32> to vector<16x34xf32>
    %112 = vector.extract_strided_slice %97 {offsets = [0, 14], sizes = [16, 34], strides = [1, 1]} : vector<16x64xf32> to vector<16x34xf32>
    %113 = vector.extract_strided_slice %97 {offsets = [0, 15], sizes = [16, 34], strides = [1, 1]} : vector<16x64xf32> to vector<16x34xf32>
    %114 = vector.extract_strided_slice %97 {offsets = [0, 16], sizes = [16, 34], strides = [1, 1]} : vector<16x64xf32> to vector<16x34xf32>
    %115 = vector.extract_strided_slice %97 {offsets = [0, 17], sizes = [16, 34], strides = [1, 1]} : vector<16x64xf32> to vector<16x34xf32>
    %116 = vector.extract_strided_slice %97 {offsets = [0, 18], sizes = [16, 34], strides = [1, 1]} : vector<16x64xf32> to vector<16x34xf32>
    %117 = vector.extract_strided_slice %97 {offsets = [0, 19], sizes = [16, 34], strides = [1, 1]} : vector<16x64xf32> to vector<16x34xf32>
    %118 = vector.extract_strided_slice %97 {offsets = [0, 20], sizes = [16, 34], strides = [1, 1]} : vector<16x64xf32> to vector<16x34xf32>
    %119 = vector.extract_strided_slice %97 {offsets = [0, 21], sizes = [16, 34], strides = [1, 1]} : vector<16x64xf32> to vector<16x34xf32>
    %120 = vector.extract_strided_slice %97 {offsets = [0, 22], sizes = [16, 34], strides = [1, 1]} : vector<16x64xf32> to vector<16x34xf32>
    %121 = vector.extract_strided_slice %97 {offsets = [0, 23], sizes = [16, 34], strides = [1, 1]} : vector<16x64xf32> to vector<16x34xf32>
    %122 = vector.extract_strided_slice %97 {offsets = [0, 24], sizes = [16, 34], strides = [1, 1]} : vector<16x64xf32> to vector<16x34xf32>
    %123 = vector.extract_strided_slice %97 {offsets = [0, 25], sizes = [16, 34], strides = [1, 1]} : vector<16x64xf32> to vector<16x34xf32>
    %124 = vector.extract_strided_slice %97 {offsets = [0, 26], sizes = [16, 34], strides = [1, 1]} : vector<16x64xf32> to vector<16x34xf32>
    %125 = vector.extract_strided_slice %97 {offsets = [0, 27], sizes = [16, 34], strides = [1, 1]} : vector<16x64xf32> to vector<16x34xf32>
    %126 = vector.extract_strided_slice %97 {offsets = [0, 28], sizes = [16, 34], strides = [1, 1]} : vector<16x64xf32> to vector<16x34xf32>
    %127 = vector.extract_strided_slice %97 {offsets = [0, 29], sizes = [16, 34], strides = [1, 1]} : vector<16x64xf32> to vector<16x34xf32>
    %128 = vector.extract_strided_slice %97 {offsets = [0, 30], sizes = [16, 34], strides = [1, 1]} : vector<16x64xf32> to vector<16x34xf32>
    %129 = tpu.concatenate %98, %99, %100, %101, %102, %103, %104, %105, %106, %107, %108, %109, %110, %111, %112, %113 in 0 : vector<16x34xf32>, vector<16x34xf32>, vector<16x34xf32>, vector<16x34xf32>, vector<16x34xf32>, vector<16x34xf32>, vector<16x34xf32>, vector<16x34xf32>, vector<16x34xf32>, vector<16x34xf32>, vector<16x34xf32>, vector<16x34xf32>, vector<16x34xf32>, vector<16x34xf32>, vector<16x34xf32>, vector<16x34xf32> -> vector<256x34xf32>
    %130 = tpu.concatenate %114, %115, %116, %117, %118, %119, %120, %121, %122, %123, %124, %125, %126, %127, %128 in 0 : vector<16x34xf32>, vector<16x34xf32>, vector<16x34xf32>, vector<16x34xf32>, vector<16x34xf32>, vector<16x34xf32>, vector<16x34xf32>, vector<16x34xf32>, vector<16x34xf32>, vector<16x34xf32>, vector<16x34xf32>, vector<16x34xf32>, vector<16x34xf32>, vector<16x34xf32>, vector<16x34xf32> -> vector<240x34xf32>
    %131 = tpu.concatenate %129, %130 in 0 : vector<256x34xf32>, vector<240x34xf32> -> vector<496x34xf32>
    %132 = tpu.concatenate %96, %131 in 1 : vector<496x34xf32>, vector<496x34xf32> -> vector<496x68xf32>
    %c0_21 = arith.constant 0 : index
    %c0_22 = arith.constant 0 : index
    %133 = vector.load %arg5[%c0_21, %c0_22] : memref<1x496xf32, #tpu.memory_space<vmem>>, vector<1x496xf32>
    %cst_23 = arith.constant dense<0.000000e+00> : vector<1x68xf32>
    %134 = tpu.matmul %133, %132, %cst_23 {dimension_numbers = #tpu.dot_dimension_numbers<[1], [0], [0], [1], [0, 0, 1, 1], [], []>} : vector<1x496xf32>, vector<496x68xf32>, vector<1x68xf32> -> vector<1x68xf32>
    %c0_24 = arith.constant 0 : index
    %c0_25 = arith.constant 0 : index
    %135 = vector.load %arg6[%c0_24, %c0_25] : memref<1x1xf32, #tpu.memory_space<vmem>>, vector<1x1xf32>
    %136 = vector.broadcast %135 : vector<1x1xf32> to vector<1x68xf32>
    %137 = arith.addf %134, %136 : vector<1x68xf32>
    %138 = vector.extract_strided_slice %137 {offsets = [0, 0], sizes = [1, 34], strides = [1, 1]} : vector<1x68xf32> to vector<1x34xf32>
    %139 = vector.extract_strided_slice %137 {offsets = [0, 34], sizes = [1, 34], strides = [1, 1]} : vector<1x68xf32> to vector<1x34xf32>
    %140 = tpu.concatenate %138, %139 in 0 : vector<1x34xf32>, vector<1x34xf32> -> vector<2x34xf32>
    %c0_26 = arith.constant 0 : index
    %c0_27 = arith.constant 0 : index
    %141 = vector.load %arg7[%c0_26, %c0_27] : memref<2x34xf32, #tpu.memory_space<vmem>>, vector<2x34xf32>
    tpu.vector_store %arg7[%c0_26, %c0_27], %140 {strides = array<i32>} : memref<2x34xf32, #tpu.memory_space<vmem>>, vector<2x34xf32>,
    return
  }
}

</mosaic_0001>

<bundles_post_ra>
// kernel: cnn2layers_forward.1
= control target key start
LH: loop header
LB: loop body
LE: loop exit
PB: predicated region body
PF: predicated region fallthrough
CT: control target
= control target key end

     0   :  { %s2211_s0 = inlined_call_operand.vmem [shape: f32[2,4,64], index: 0, kind: input, shape index: {}]   ;;  %s2212_s1 = inlined_call_operand.vmem [shape: f32[32,20], index: 1, kind: input, shape index: {}]   ;;  %s2213_s2 = inlined_call_operand.vmem [shape: f32[32,1], index: 2, kind: input, shape index: {}]   ;;  %s2214_s3 = inlined_call_operand.vmem [shape: f32[16,160], index: 3, kind: input, shape index: {}]   ;;  %s2215_s4 = inlined_call_operand.vmem [shape: f32[16,1], index: 4, kind: input, shape index: {}]   ;;  %s2216_s5 = inlined_call_operand.vmem [shape: f32[1,496], index: 5, kind: input, shape index: {}]   ;;  %s2217_s6 = inlined_call_operand.<no memory space> [shape: f32[1,1], index: 6, kind: input, shape index: {}]   ;;  %s2218_s7 = inlined_call_operand.hbm [shape: f32[2,34], index: 7, kind: output, shape index: {}]  }
   0x1   :  { %v12_v0 = vstv %s2217_s6 }
   0x2   :  { %13 = vst [vmem:[#allocation2] sm:$0x1] %v12_v0 }
   0x3   :  { %v1190_v1 = vld [vmem:[%s2211_s0 + $0x4] sm:$0xf]  ;;  %s1319_s28 = smov 2  }
   0x4   :  { %58 = vrot.lane.b32.xlu0 %v1190_v1, %s1319_s28 }
   0x5   :  { %14 = vsyncpa [#allocation4], 0  ;;  %v29_v2 = vld [vmem:[%s2211_s0] sm:$0xf]  ;;  %vm34_vm0 = vcmask 15360   ;;  %vm36_vm1 = vcmask 539648  }
   0x6   :  { %s1320_s6 = smov 124   ;;  %s1321_s8 = smov 125   ;;  %v93_v11 = vld [vmem:[%s2212_s1] sm:$0xff]  ;;  %vm121_vm2 = vcmask 162816   ;;  %vm52_vm3 = vcmask 1043456   ;;  %v1325_v16 = vmov 0  }
   0x7   :  { %s1322_s0 = smov 126   ;;  %s1323_s9 = smov 127   ;;  %1253 = vmatprep.mubr.msk.f32.mxu0 %vm121_vm2, %v93_v11  ;;  %1284 = vset.pattern.permute.xlu0 %v1325_v16  ;;  %v100_v17 = vld [vmem:[%s2213_s2 + $0x18] sm:$0xff]  ;;  %v98_v20 = vld [vmem:[%s2213_s2 + $0x8] sm:$0xff]  ;;  %v99_v21 = vld [vmem:[%s2213_s2 + $0x10] sm:$0xff]  ;;  %vm89_vm4 = vcmask 523264  }
   0x8   :  { %31 = vrot.lane.b32.xlu0 %v29_v2, %s1319_s28  ;;  %s1324_s12 = smov 64   ;;  %1283 = vset.pattern.permute.xlu1 %v1325_v16  ;;  %v97_v22 = vld [vmem:[%s2213_s2] sm:$0xff]  ;;  %v94_v35 = vld [vmem:[%s2212_s1 + $0x8] sm:$0xff]  ;;  %v95_v36 = vld [vmem:[%s2212_s1 + $0x10] sm:$0xff]  ;;  %vm470_vm9 = vcmask 261120   ;;  %s1329_s16 = smov 122  }
   0x9   :  { %v96_v37 = vld [vmem:[%s2212_s1 + $0x18] sm:$0xff]  ;;  %s1326_s1 = smov 66   ;;  %s1330_s17 = smov 123   ;;  %vm930_vm12 = vcmask 277504   ;;  %vm1024_vm13 = vcmask 916480   ;;  %vm1172_vm14 = vcmask 1040384  }
   0xa   :  { %s1331_s18 = smov 114   ;;  %s1332_s19 = smov 115   ;;  %vm1174_vm15 = vcmask 271360  }
   0xb   :  { %s1337_s20 = smov 120   ;;  %s1338_s2 = smov 113  }
   0xc   :  { %s1339_s21 = smov 112   ;;  %s1340_s22 = smov 98  }
   0xd   :  { %s1342_s25 = smov [#allocation3]  }
  0x76   :  { %v59_v3 = vpop.permute.xlu0 %58 }
  0x77   :  { %v61_v4 = vsel %vm34_vm0, 0.0, %v59_v3 }
  0x78   :  { %v62_v5 = vsel %vm36_vm1, %v61_v4, 0.0 }
  0x79   :  { %74 = vrot.lane.b32.xlu1 %v62_v5, %s1320_s6  ;;  %v64_v6 = vrot.slane %v62_v5, 4 }
  0x7a   :  { %v32_v7 = vpop.permute.xlu0 %31 }
  0x7b   :  { %71 = vrot.lane.b32.xlu0 %v64_v6, %s1321_s8  ;;  %v35_v8 = vsel %vm34_vm0, 0.0, %v32_v7 }
  0x7c   :  { %v37_v9 = vsel %vm36_vm1, %v35_v8, 0.0 }
  0x7d   :  { %68 = vrot.lane.b32.xlu1 %v62_v5, %s1322_s0  ;;  %v39_v10 = vrot.slane %v37_v9, 4 }
  0x7f   :  { %49 = vrot.lane.b32.xlu0 %v37_v9, %s1320_s6 }
  0x81   :  { %65 = vrot.lane.b32.xlu1 %v64_v6, %s1323_s9 }
  0x83   :  { %43 = vrot.lane.b32.xlu0 %v37_v9, %s1322_s0 }
  0x85   :  { %46 = vrot.lane.b32.xlu1 %v39_v10, %s1321_s8 }
  0xeb   :  { %v75_v12 = vpop.permute.xlu1 %74 }
  0xec   :  { %84 = vrot.lane.b32.xlu1 %v75_v12, %s1324_s12 }
  0xed   :  { %v72_v13 = vpop.permute.xlu0 %71 }
  0xef   :  { %v69_v14 = vpop.permute.xlu1 %68 }
  0xf0   :  { %40 = vrot.lane.b32.xlu1 %v39_v10, %s1323_s9  ;;  %v77_v15 = vsel %vm52_vm3, %v69_v14, %v72_v13 }
  0xf1   :  { %82 = vrot.lane.b32.xlu0 %v77_v15, %s1324_s12  ;;  %v50_v24 = vpop.permute.xlu0 %49 }
  0xf3   :  { %v66_v18 = vpop.permute.xlu1 %65 }
  0xf4   :  { %v76_v19 = vsel %vm52_vm3, %v62_v5, %v66_v18  ;;  %118 = vperm.xlu1 %1283, %v100_v17  }
  0xf5   :  { %80 = vrot.lane.b32.xlu0 %v76_v19, %s1324_s12  ;;  %v44_v26 = vpop.permute.xlu0 %43 }
  0xf7   :  { %v47_v23 = vpop.permute.xlu1 %46 }
  0xf8   :  { %108 = vperm.xlu1 %1283, %v98_v20   ;;  %v54_v28 = vsel %vm52_vm3, %v44_v26, %v47_v23  ;;  %v459_v26 = vld [vmem:[%s2215_s4 + $0x8] sm:$0xff] }
  0xf9   :  { %113 = vperm.xlu0 %1284, %v99_v21  }
  0xfc   :  { %103 = vperm.xlu1 %1283, %v97_v22  }
 0x15e   :  { %v85_v25 = vpop.permute.xlu1 %84 }
 0x15f   :  { %v92_v27 = vsel %vm89_vm4, %v50_v24, %v85_v25 }
 0x160   :  { %1247 = vmatprep.subr.msk.mxu0 %vm52_vm3, %v92_v27 }
 0x161   :  { %1248 = vmatpush3.msk.msra.mxu0 %vm52_vm3, %v92_v27 }
 0x162   :  { %v41_v30 = vpop.permute.xlu1 %40 }
 0x163   :  { %v83_v29 = vpop.permute.xlu0 %82  ;;  %v53_v32 = vsel %vm52_vm3, %v37_v9, %v41_v30 }
 0x164   :  { %v91_v31 = vsel %vm89_vm4, %v54_v28, %v83_v29 }
 0x165   :  { %1249 = vmatprep.subr.mxu0 %v91_v31 }
 0x166   :  { %1250 = vmatpush3.msra.mxu0 %v91_v31 }
 0x167   :  { %v81_v33 = vpop.permute.xlu0 %80 }
 0x168   :  { %v90_v34 = vsel %vm89_vm4, %v53_v32, %v81_v33 }
 0x169   :  { %1251 = vmatprep.subr.mxu0 %v90_v34 }
 0x16a   :  { %1252 = vmatpush3.msra.mxu0 %v90_v34  ;;  %v2219_v34 = vmov 0.0  }
 0x16b   :  { %1254 = vmatmul.mubr.msk.f32.vlgmr.msra.gmra.mxu0 %vm121_vm2, %v94_v35  ;;  %477 = vmatprep.subr.mxu1 %v2219_v34 }
 0x16c   :  { %1256 = vmatprep.mubr.msk.f32.mxu0 %vm121_vm2, %v95_v36  ;;  %1097 = vmatprep.subr.mxu0 %v2219_v34 }
 0x16f   :  { %1257 = vmatmul.mubr.msk.f32.gmra.mxu0 %vm121_vm2, %v96_v37  ;;  %v119_v38 = vpop.permute.xlu1 %118 }
 0x173   :  { %v109_v39 = vpop.permute.xlu1 %108 }
 0x174   :  { %v114_v47 = vpop.permute.xlu0 %113 }
 0x177   :  { %v104_v41 = vpop.permute.xlu1 %103 }
 0x22b   :  { %v1255_v40 = vpop.f32.mrf.mxu0 }
 0x22c   :  { %v209_v42 = vadd.f32 %v1255_v40, %v109_v39 }
 0x22d   :  { %v203_v43 = vpop.f32.mrf.mxu0 }
 0x22e   :  { %v204_v44 = vadd.f32 %v203_v43, %v104_v41  ;;  %v228_v45 = vmul.f32 1.442695, %v209_v42  ;;  %vm223_vm7 = vcmp.gt.f32.partialorder %v209_v42, 0.0  ;;  %v455_v41 = vld [vmem:[%s2214_s3 + $0x8] sm:$0xff] }
 0x22f   :  { %v1258_v46 = vpop.f32.mrf.mxu0  ;;  %1200 = vmatprep.mubr.msk.f32.mxu1 %vm470_vm9, %v455_v41  ;;  %v456_v41 = vld [vmem:[%s2214_s3 + $0x10] sm:$0xff] }
 0x230   :  { %v219_v48 = vadd.f32 %v1258_v46, %v119_v38  ;;  %v226_v49 = vmul.f32 1.442695, %v204_v44  ;;  %1285 = vpow2.f32 %v228_v45  ;;  %vm222_vm8 = vcmp.gt.f32.partialorder %v204_v44, 0.0  ;;  %v458_v45 = vld [vmem:[%s2215_s4] sm:$0xff] }
 0x231   :  { %v213_v50 = vpop.f32.mrf.mxu0 }
 0x232   :  { %v232_v51 = vmul.f32 1.442695, %v219_v48  ;;  %v214_v52 = vadd.f32 %v213_v50, %v114_v47  ;;  %vm225_vm5 = vcmp.gt.f32.partialorder %v219_v48, 0.0 }
 0x234   :  { %1287 = vpow2.f32 %v232_v51  ;;  %v230_v53 = vmul.f32 1.442695, %v214_v52  ;;  %vm224_vm6 = vcmp.gt.f32.partialorder %v214_v52, 0.0 }
 0x235   :  { %1289 = vpow2.f32 %v226_v49 }
 0x236   :  { %1291 = vpow2.f32 %v230_v53 }
 0x23d   :  { %v1286_v54 = vpop.eup %1285 }
 0x23e   :  { %v1197_v61 = vadd.f32 -1.0, %v1286_v54 }
 0x240   :  { %v239_v0 = vsel %vm223_vm7, %v209_v42, %v1197_v61 }
 0x241   :  { %v1288_v55 = vpop.eup %1287 }
 0x242   :  { %v1290_v56 = vpop.eup %1289  ;;  %v1199_v57 = vadd.f32 -1.0, %v1288_v55 }
 0x243   :  { %v1292_v58 = vpop.eup %1291  ;;  %v1196_v63 = vadd.f32 -1.0, %v1290_v56 }
 0x244   :  { %v241_v59 = vsel %vm225_vm5, %v219_v48, %v1199_v57  ;;  %v1198_v60 = vadd.f32 -1.0, %v1292_v58 }
 0x245   :  { %324 = vrot.lane.b32.xlu0 %v241_v59, %s1326_s1  ;;  %v238_v1 = vsel %vm222_vm8, %v204_v44, %v1196_v63 }
 0x246   :  { %v240_v62 = vsel %vm224_vm6, %v214_v52, %v1198_v60 }
 0x247   :  { %322 = vrot.lane.b32.xlu1 %v240_v62, %s1326_s1 }
 0x249   :  { %320 = vrot.lane.b32.xlu0 %v239_v0, %s1326_s1 }
 0x24b   :  { %318 = vrot.lane.b32.xlu1 %v238_v1, %s1326_s1  ;;  %s1182_s1 = sshll.u32 %s1342_s25, 4  ;;  %s1183_s1 = int_to_ptr.vmem [resolvable:$true] %s1182_s1 }
 0x24c   :  { %s1297_s26 = scalar_lea.vmem %s1183_s1, 32  ;;  %p1302_p1 = scmp.lt.s32.totalorder %s1183_s1, %s1183_s1 }
 0x24d   :  { %252 = vrot.lane.b32.xlu0 %v241_v59, %s1319_s28  ;;  %p1298_p0 = scmp.ne.s32.totalorder %s1183_s1, %s1297_s26  ;;  %p1303_p2 = scmp.lt.s32.totalorder %s1297_s26, %s1297_s26 }
 0x24f   :  { %248 = vrot.lane.b32.xlu1 %v239_v0, %s1319_s28  ;;  %p1304_p3 = por %p1303_p2, %p1302_p1 }
 0x251   :  { %p1305_p4 = pnand %p1304_p3, %p1298_p0 }
 0x253   :  { %246 = vrot.lane.b32.xlu1 %v238_v1, %s1319_s28 }
 0x257   :  { %250 = vrot.lane.b32.xlu1 %v240_v62, %s1319_s28 }
 0x2b7   :  { %v325_v2 = vpop.permute.xlu0 %324 }
 0x2b8   :  { %v333_v8 = vsel %vm34_vm0, 0.0, %v325_v2 }
 0x2b9   :  { %v323_v3 = vpop.permute.xlu1 %322  ;;  %v337_v11 = vsel %vm36_vm1, %v333_v8, 0.0 }
 0x2ba   :  { %v332_v12 = vsel %vm34_vm0, 0.0, %v323_v3 }
 0x2bb   :  { %v321_v4 = vpop.permute.xlu0 %320  ;;  %v1466_v13 = vsel %vm36_vm1, %v332_v12, 0.0 }
 0x2bc   :  { %v331_v5 = vsel %vm34_vm0, 0.0, %v321_v4 }
 0x2bd   :  { %v335_v6 = vsel %vm36_vm1, %v331_v5, 0.0  ;;  %v319_v7 = vpop.permute.xlu1 %318 }
 0x2be   :  { %v330_v9 = vsel %vm34_vm0, 0.0, %v319_v7  ;;  %360 = vrot.lane.b32.xlu0 %v335_v6, %s1321_s8 }
 0x2bf   :  { %v1456_v10 = vsel %vm36_vm1, %v330_v9, 0.0  ;;  %v253_v14 = vpop.permute.xlu0 %252 }
 0x2c0   :  { %358 = vrot.lane.b32.xlu1 %v1456_v10, %s1321_s8  ;;  %v261_v16 = vsel %vm34_vm0, 0.0, %v253_v14 }
 0x2c1   :  { %v249_v15 = vpop.permute.xlu1 %248  ;;  %v1488_v17 = vsel %vm36_vm1, %v261_v16, 0.0 }
 0x2c2   :  { %364 = vrot.lane.b32.xlu0 %v337_v11, %s1321_s8  ;;  %v259_v18 = vsel %vm34_vm0, 0.0, %v249_v15 }
 0x2c3   :  { %v1494_v20 = vsel %vm36_vm1, %v259_v18, 0.0 }
 0x2c4   :  { %350 = vrot.lane.b32.xlu1 %v1456_v10, %s1322_s0 }
 0x2c5   :  { %v247_v19 = vpop.permute.xlu1 %246 }
 0x2c6   :  { %362 = vrot.lane.b32.xlu0 %v1466_v13, %s1321_s8  ;;  %v258_v21 = vsel %vm34_vm0, 0.0, %v247_v19 }
 0x2c7   :  { %v1500_v22 = vsel %vm36_vm1, %v258_v21, 0.0 }
 0x2c8   :  { %354 = vrot.lane.b32.xlu1 %v1466_v13, %s1322_s0 }
 0x2c9   :  { %v251_v23 = vpop.permute.xlu1 %250 }
 0x2ca   :  { %356 = vrot.lane.b32.xlu0 %v337_v11, %s1322_s0  ;;  %v260_v24 = vsel %vm34_vm0, 0.0, %v251_v23 }
 0x2cb   :  { %v1516_v25 = vsel %vm36_vm1, %v260_v24, 0.0 }
 0x2cc   :  { %342 = vrot.lane.b32.xlu1 %v1456_v10, %s1323_s9 }
 0x2ce   :  { %352 = vrot.lane.b32.xlu0 %v335_v6, %s1322_s0 }
 0x2d0   :  { %346 = vrot.lane.b32.xlu1 %v1466_v13, %s1323_s9 }
 0x2d2   :  { %348 = vrot.lane.b32.xlu0 %v337_v11, %s1323_s9 }
 0x2d4   :  { %366 = vrot.lane.b32.xlu1 %v1456_v10, %s1320_s6 }
 0x2d6   :  { %344 = vrot.lane.b32.xlu0 %v335_v6, %s1323_s9 }
 0x2d8   :  { %370 = vrot.lane.b32.xlu1 %v1466_v13, %s1320_s6 }
 0x2da   :  { %372 = vrot.lane.b32.xlu0 %v337_v11, %s1320_s6 }
 0x2de   :  { %368 = vrot.lane.b32.xlu0 %v335_v6, %s1320_s6 }
 0x2e2   :  { %300 = vrot.lane.b32.xlu0 %v1488_v17, %s1321_s8 }
 0x2e6   :  { %296 = vrot.lane.b32.xlu0 %v1494_v20, %s1321_s8 }
 0x2ea   :  { %294 = vrot.lane.b32.xlu0 %v1500_v22, %s1321_s8 }
 0x2ee   :  { %288 = vrot.lane.b32.xlu0 %v1488_v17, %s1322_s0 }
 0x2f2   :  { %284 = vrot.lane.b32.xlu0 %v1494_v20, %s1322_s0 }
 0x2f6   :  { %282 = vrot.lane.b32.xlu0 %v1500_v22, %s1322_s0 }
 0x2fa   :  { %276 = vrot.lane.b32.xlu0 %v1488_v17, %s1323_s9 }
 0x2fe   :  { %272 = vrot.lane.b32.xlu0 %v1494_v20, %s1323_s9 }
 0x302   :  { %298 = vrot.lane.b32.xlu0 %v1516_v25, %s1321_s8 }
 0x306   :  { %270 = vrot.lane.b32.xlu0 %v1500_v22, %s1323_s9 }
 0x30a   :  { %286 = vrot.lane.b32.xlu0 %v1516_v25, %s1322_s0 }
 0x30e   :  { %274 = vrot.lane.b32.xlu0 %v1516_v25, %s1323_s9 }
 0x312   :  { %380 = vrot.lane.b32.xlu0 %v337_v11, %s1324_s12 }
 0x316   :  { %376 = vrot.lane.b32.xlu0 %v335_v6, %s1324_s12 }
 0x31a   :  { %312 = vrot.lane.b32.xlu0 %v1488_v17, %s1320_s6 }
 0x31e   :  { %310 = vrot.lane.b32.xlu0 %v1516_v25, %s1320_s6 }
 0x322   :  { %308 = vrot.lane.b32.xlu0 %v1494_v20, %s1320_s6 }
 0x326   :  { %306 = vrot.lane.b32.xlu0 %v1500_v22, %s1320_s6 }
 0x32a   :  { %467 = vperm.xlu0 %1284, %v459_v26  }
 0x330   :  { %v361_v27 = vpop.permute.xlu0 %360 }
 0x331   :  { %400 = vrot.lane.b32.xlu1 %v361_v27, %s1324_s12 }
 0x332   :  { %v359_v35 = vpop.permute.xlu1 %358 }
 0x334   :  { %v365_v28 = vpop.permute.xlu0 %364 }
 0x336   :  { %v351_v36 = vpop.permute.xlu1 %350 }
 0x338   :  { %v363_v29 = vpop.permute.xlu0 %362 }
 0x33a   :  { %v355_v37 = vpop.permute.xlu1 %354 }
 0x33c   :  { %v357_v30 = vpop.permute.xlu0 %356 }
 0x33e   :  { %v343_v38 = vpop.permute.xlu1 %342 }
 0x340   :  { %v353_v31 = vpop.permute.xlu0 %352 }
 0x341   :  { %392 = vrot.lane.b32.xlu1 %v353_v31, %s1324_s12 }
 0x342   :  { %v347_v39 = vpop.permute.xlu1 %346 }
 0x344   :  { %v349_v32 = vpop.permute.xlu0 %348 }
 0x346   :  { %v367_v42 = vpop.permute.xlu1 %366 }
 0x348   :  { %v345_v33 = vpop.permute.xlu0 %344 }
 0x349   :  { %384 = vrot.lane.b32.xlu1 %v345_v33, %s1324_s12 }
 0x34a   :  { %v371_v44 = vpop.permute.xlu1 %370 }
 0x34c   :  { %v373_v40 = vpop.permute.xlu0 %372 }
 0x34d   :  { %398 = vrot.lane.b32.xlu1 %v359_v35, %s1324_s12 }
 0x350   :  { %v369_v43 = vpop.permute.xlu0 %368 }
 0x351   :  { %390 = vrot.lane.b32.xlu1 %v351_v36, %s1324_s12 }
 0x354   :  { %v301_v46 = vpop.permute.xlu0 %300 }
 0x355   :  { %404 = vrot.lane.b32.xlu1 %v365_v28, %s1324_s12 }
 0x358   :  { %v297_v47 = vpop.permute.xlu0 %296 }
 0x359   :  { %396 = vrot.lane.b32.xlu1 %v357_v30, %s1324_s12 }
 0x35c   :  { %v295_v48 = vpop.permute.xlu0 %294 }
 0x35d   :  { %388 = vrot.lane.b32.xlu1 %v349_v32, %s1324_s12 }
 0x360   :  { %v289_v49 = vpop.permute.xlu0 %288 }
 0x361   :  { %402 = vrot.lane.b32.xlu1 %v363_v29, %s1324_s12 }
 0x364   :  { %v285_v50 = vpop.permute.xlu0 %284 }
 0x365   :  { %382 = vrot.lane.b32.xlu1 %v343_v38, %s1324_s12 }
 0x368   :  { %v283_v51 = vpop.permute.xlu0 %282 }
 0x369   :  { %394 = vrot.lane.b32.xlu1 %v355_v37, %s1324_s12 }
 0x36c   :  { %v277_v53 = vpop.permute.xlu0 %276 }
 0x36d   :  { %378 = vrot.lane.b32.xlu1 %v1466_v13, %s1324_s12 }
 0x370   :  { %v273_v55 = vpop.permute.xlu0 %272 }
 0x371   :  { %386 = vrot.lane.b32.xlu1 %v347_v39, %s1324_s12 }
 0x374   :  { %v299_v58 = vpop.permute.xlu0 %298 }
 0x375   :  { %374 = vrot.lane.b32.xlu1 %v1456_v10, %s1324_s12 }
 0x378   :  { %v271_v60 = vpop.permute.xlu0 %270 }
 0x379   :  { %412 = vrot.lane.b32.xlu1 %v373_v40, %s1324_s12  ;;  %v457_v40 = vld [vmem:[%s2214_s3 + $0x18] sm:$0xff] }
 0x37c   :  { %v287_v0 = vpop.permute.xlu0 %286 }
 0x37d   :  { %408 = vrot.lane.b32.xlu1 %v369_v43, %s1324_s12 }
 0x380   :  { %v275_v2 = vpop.permute.xlu0 %274 }
 0x381   :  { %410 = vrot.lane.b32.xlu1 %v371_v44, %s1324_s12 }
 0x384   :  { %v381_v8 = vpop.permute.xlu0 %380 }
 0x385   :  { %406 = vrot.lane.b32.xlu1 %v367_v42, %s1324_s12  ;;  %v437_v27 = vsel %vm89_vm4, %v1488_v17, %v381_v8 }
 0x388   :  { %v377_v13 = vpop.permute.xlu0 %376 }
 0x389   :  { %462 = vperm.xlu1 %1283, %v458_v45   ;;  %v435_v31 = vsel %vm89_vm4, %v1494_v20, %v377_v13 }
 0x38c   :  { %v313_v21 = vpop.permute.xlu0 %312 }
 0x390   :  { %v311_v28 = vpop.permute.xlu0 %310 }
 0x394   :  { %v309_v33 = vpop.permute.xlu0 %308 }
 0x398   :  { %v307_v37 = vpop.permute.xlu0 %306 }
 0x3a3   :  { %v401_v52 = vpop.permute.xlu1 %400 }
 0x3a4   :  { %v447_v5 = vsel %vm89_vm4, %v297_v47, %v401_v52 }
 0x3a5   :  { %v468_v47 = vpop.permute.xlu0 %467 }
 0x3b3   :  { %v393_v54 = vpop.permute.xlu1 %392 }
 0x3b4   :  { %v443_v12 = vsel %vm89_vm4, %v285_v50, %v393_v54 }
 0x3bb   :  { %v385_v56 = vpop.permute.xlu1 %384 }
 0x3bc   :  { %v439_v23 = vsel %vm89_vm4, %v273_v55, %v385_v56 }
 0x3bf   :  { %v399_v57 = vpop.permute.xlu1 %398 }
 0x3c0   :  { %v446_v7 = vsel %vm89_vm4, %v295_v48, %v399_v57 }
 0x3c3   :  { %v391_v59 = vpop.permute.xlu1 %390 }
 0x3c4   :  { %v442_v15 = vsel %vm89_vm4, %v283_v51, %v391_v59 }
 0x3c7   :  { %v405_v61 = vpop.permute.xlu1 %404 }
 0x3c8   :  { %v449_v62 = vsel %vm89_vm4, %v301_v46, %v405_v61 }
 0x3c9   :  { %478 = vmatpush1.msra.mxu1 %v449_v62 }
 0x3ca   :  { %479 = vmatprep.subr.mxu1 %v2219_v34 }
 0x3cb   :  { %v397_v63 = vpop.permute.xlu1 %396 }
 0x3cc   :  { %v445_v9 = vsel %vm89_vm4, %v289_v49, %v397_v63 }
 0x3cf   :  { %v389_v1 = vpop.permute.xlu1 %388 }
 0x3d0   :  { %v441_v16 = vsel %vm89_vm4, %v277_v53, %v389_v1 }
 0x3d3   :  { %v403_v3 = vpop.permute.xlu1 %402 }
 0x3d4   :  { %v448_v4 = vsel %vm89_vm4, %v299_v58, %v403_v3 }
 0x3d5   :  { %480 = vmatpush1.msra.mxu1 %v448_v4 }
 0x3d6   :  { %481 = vmatprep.subr.mxu1 %v2219_v34 }
 0x3d7   :  { %v383_v6 = vpop.permute.xlu1 %382  ;;  %482 = vmatpush1.msra.mxu1 %v447_v5 }
 0x3d8   :  { %483 = vmatprep.subr.mxu1 %v2219_v34  ;;  %v438_v26 = vsel %vm89_vm4, %v271_v60, %v383_v6 }
 0x3d9   :  { %484 = vmatpush1.msra.mxu1 %v446_v7 }
 0x3da   :  { %485 = vmatprep.subr.mxu1 %v2219_v34 }
 0x3db   :  { %v395_v10 = vpop.permute.xlu1 %394  ;;  %486 = vmatpush1.msra.mxu1 %v445_v9 }
 0x3dc   :  { %487 = vmatprep.subr.mxu1 %v2219_v34  ;;  %v444_v11 = vsel %vm89_vm4, %v287_v0, %v395_v10 }
 0x3dd   :  { %488 = vmatpush1.msra.mxu1 %v444_v11 }
 0x3de   :  { %489 = vmatprep.subr.mxu1 %v2219_v34 }
 0x3df   :  { %v379_v14 = vpop.permute.xlu1 %378  ;;  %490 = vmatpush1.msra.mxu1 %v443_v12 }
 0x3e0   :  { %491 = vmatprep.subr.mxu1 %v2219_v34  ;;  %v436_v30 = vsel %vm89_vm4, %v1516_v25, %v379_v14 }
 0x3e1   :  { %492 = vmatpush1.msra.mxu1 %v442_v15 }
 0x3e2   :  { %493 = vmatprep.subr.mxu1 %v2219_v34 }
 0x3e3   :  { %v387_v18 = vpop.permute.xlu1 %386  ;;  %494 = vmatpush1.msra.mxu1 %v441_v16 }
 0x3e4   :  { %495 = vmatprep.subr.mxu1 %v2219_v34  ;;  %v440_v19 = vsel %vm89_vm4, %v275_v2, %v387_v18 }
 0x3e5   :  { %496 = vmatpush1.msra.mxu1 %v440_v19 }
 0x3e6   :  { %497 = vmatprep.subr.mxu1 %v2219_v34 }
 0x3e7   :  { %v375_v24 = vpop.permute.xlu1 %374  ;;  %498 = vmatpush1.msra.mxu1 %v439_v23 }
 0x3e8   :  { %499 = vmatprep.subr.mxu1 %v2219_v34  ;;  %v434_v17 = vsel %vm89_vm4, %v1500_v22, %v375_v24  ;;  %v454_v22 = vld [vmem:[%s2214_s3] sm:$0xff]  ;;  %s1328_s3 = smov 121  }
 0x3e9   :  { %500 = vmatpush1.msra.mxu1 %v438_v26 }
 0x3ea   :  { %501 = vmatprep.subr.mxu1 %v2219_v34 }
 0x3eb   :  { %v413_v29 = vpop.permute.xlu1 %412  ;;  %502 = vmatpush1.msra.mxu1 %v437_v27 }
 0x3ec   :  { %503 = vmatprep.subr.mxu1 %v2219_v34  ;;  %v453_v35 = vsel %vm89_vm4, %v313_v21, %v413_v29 }
 0x3ed   :  { %504 = vmatpush1.msra.mxu1 %v436_v30 }
 0x3ee   :  { %505 = vmatprep.subr.mxu1 %v2219_v34 }
 0x3ef   :  { %v409_v32 = vpop.permute.xlu1 %408  ;;  %506 = vmatpush1.msra.mxu1 %v435_v31 }
 0x3f0   :  { %507 = vmatprep.subr.mxu1 %v2219_v34  ;;  %v451_v20 = vsel %vm89_vm4, %v309_v33, %v409_v32 }
 0x3f1   :  { %508 = vmatpush1.msra.mxu1 %v434_v17 }
 0x3f2   :  { %533 = vmatprep.subr.mxu1 %v2219_v34 }
 0x3f3   :  { %v411_v25 = vpop.permute.xlu1 %410  ;;  %534 = vmatpush2.msra.mxu1 %v453_v35 }
 0x3f4   :  { %535 = vmatprep.subr.mxu1 %v2219_v34  ;;  %v452_v36 = vsel %vm89_vm4, %v311_v28, %v411_v25 }
 0x3f5   :  { %536 = vmatpush2.msra.mxu1 %v452_v36 }
 0x3f6   :  { %537 = vmatprep.subr.mxu1 %v2219_v34 }
 0x3f7   :  { %v407_v38 = vpop.permute.xlu1 %406  ;;  %538 = vmatpush2.msra.mxu1 %v451_v20 }
 0x3f8   :  { %539 = vmatprep.subr.mxu1 %v2219_v34  ;;  %v450_v39 = vsel %vm89_vm4, %v307_v37, %v407_v38 }
 0x3f9   :  { %540 = vmatpush2.msra.mxu1 %v450_v39 }
 0x3fa   :  { %542 = vmatmul.mubr.f32.vlgmr.msra.gmra.mxu1 %v454_v22 }
 0x3fb   :  { %1201 = vmatprep.mubr.msk.f32.mxu1 %vm470_vm9, %v457_v40 }
 0x3fe   :  { %547 = vmatmul.mubr.f32.gmra.mxu1 %v456_v41 }
 0x404   :  { %v463_v42 = vpop.permute.xlu1 %462 }
 0x4ba   :  { %v543_v43 = vpop.f32.mrf.mxu1 }
 0x4bb   :  { %v544_v44 = vadd.f32 %v543_v43, %v463_v42 }
 0x4bc   :  { %v545_v45 = vpop.f32.mrf.mxu1 }
 0x4bd   :  { %v554_v46 = vmul.f32 1.442695, %v544_v44  ;;  %vm552_vm10 = vcmp.gt.f32.partialorder %v544_v44, 0.0 }
 0x4be   :  { %v548_v48 = vpop.f32.mrf.mxu1 }
 0x4bf   :  { %1293 = vpow2.f32 %v554_v46  ;;  %v549_v49 = vadd.f32 %v548_v48, %v468_v47 }
 0x4c0   :  { %v550_v50 = vpop.f32.mrf.mxu1 }
 0x4c1   :  { %v556_v51 = vmul.f32 1.442695, %v549_v49  ;;  %vm553_vm11 = vcmp.gt.f32.partialorder %v549_v49, 0.0 }
 0x4c3   :  { %1295 = vpow2.f32 %v556_v51 }
 0x4cc   :  { %v1294_v52 = vpop.eup %1293 }
 0x4cd   :  { %v1202_v53 = vadd.f32 -1.0, %v1294_v52 }
 0x4cf   :  { %v1621_v54 = vsel %vm552_vm10, %v544_v44, %v1202_v53 }
 0x4d0   :  { %2247 = vst [vmem:[#allocation6_spill] sm:$0xff] %v1621_v54  ;;  %v1296_v55 = vpop.eup %1295  ;;  %600 = vrot.lane.b32.xlu1 %v1621_v54, %s1328_s3 }
 0x4d1   :  { %v1203_v56 = vadd.f32 -1.0, %v1296_v55 }
 0x4d3   :  { %v1624_v57 = vsel %vm553_vm11, %v549_v49, %v1203_v56 }
 0x4d4   :  { %594 = vrot.lane.b32.xlu1 %v1621_v54, %s1329_s16  ;;  %602 = vrot.lane.b32.xlu0 %v1624_v57, %s1328_s3 }
 0x4d8   :  { %588 = vrot.lane.b32.xlu1 %v1621_v54, %s1330_s17  ;;  %596 = vrot.lane.b32.xlu0 %v1624_v57, %s1329_s16 }
 0x4dc   :  { %582 = vrot.lane.b32.xlu1 %v1621_v54, %s1320_s6  ;;  %590 = vrot.lane.b32.xlu0 %v1624_v57, %s1330_s17 }
 0x4e0   :  { %576 = vrot.lane.b32.xlu1 %v1621_v54, %s1321_s8  ;;  %584 = vrot.lane.b32.xlu0 %v1624_v57, %s1320_s6  ;;  %s1333_s6 = smov 116  }
 0x4e4   :  { %570 = vrot.lane.b32.xlu1 %v1621_v54, %s1322_s0  ;;  %578 = vrot.lane.b32.xlu0 %v1624_v57, %s1321_s8  ;;  %s1334_s8 = smov 117  }
 0x4e8   :  { %564 = vrot.lane.b32.xlu1 %v1621_v54, %s1323_s9  ;;  %572 = vrot.lane.b32.xlu0 %v1624_v57, %s1322_s0  ;;  %s1335_s0 = smov 118  }
 0x4ec   :  { %642 = vrot.lane.b32.xlu1 %v1621_v54, %s1331_s18  ;;  %566 = vrot.lane.b32.xlu0 %v1624_v57, %s1323_s9  ;;  %s1336_s9 = smov 119  }
 0x4f0   :  { %636 = vrot.lane.b32.xlu1 %v1621_v54, %s1332_s19  ;;  %644 = vrot.lane.b32.xlu0 %v1624_v57, %s1331_s18 }
 0x4f4   :  { %630 = vrot.lane.b32.xlu1 %v1621_v54, %s1333_s6  ;;  %638 = vrot.lane.b32.xlu0 %v1624_v57, %s1332_s19 }
 0x4f8   :  { %624 = vrot.lane.b32.xlu1 %v1621_v54, %s1334_s8  ;;  %632 = vrot.lane.b32.xlu0 %v1624_v57, %s1333_s6 }
 0x4fc   :  { %618 = vrot.lane.b32.xlu1 %v1621_v54, %s1335_s0  ;;  %626 = vrot.lane.b32.xlu0 %v1624_v57, %s1334_s8 }
 0x500   :  { %612 = vrot.lane.b32.xlu1 %v1621_v54, %s1336_s9  ;;  %620 = vrot.lane.b32.xlu0 %v1624_v57, %s1335_s0 }
 0x504   :  { %606 = vrot.lane.b32.xlu1 %v1621_v54, %s1337_s20  ;;  %614 = vrot.lane.b32.xlu0 %v1624_v57, %s1336_s9 }
 0x508   :  { %648 = vrot.lane.b32.xlu1 %v1621_v54, %s1338_s2  ;;  %608 = vrot.lane.b32.xlu0 %v1624_v57, %s1337_s20 }
 0x50c   :  { %654 = vrot.lane.b32.xlu1 %v1621_v54, %s1339_s21  ;;  %656 = vrot.lane.b32.xlu0 %v1624_v57, %s1339_s21 }
 0x510   :  { %650 = vrot.lane.b32.xlu1 %v1624_v57, %s1338_s2  ;;  %746 = vrot.lane.b32.xlu0 %v1624_v57, %s1340_s22 }
 0x542   :  { %v1669_v58 = vpop.permute.xlu1 %600 }
 0x543   :  { %682 = vrot.lane.b32.xlu1 %v1669_v58, %s1339_s21 }
 0x546   :  { %v1673_v59 = vpop.permute.xlu1 %594  ;;  %v1709_v4 = vpop.permute.xlu0 %602 }
 0x547   :  { %678 = vrot.lane.b32.xlu1 %v1673_v59, %s1339_s21 }
 0x54a   :  { %v1677_v60 = vpop.permute.xlu1 %588  ;;  %v1715_v6 = vpop.permute.xlu0 %596 }
 0x54b   :  { %674 = vrot.lane.b32.xlu1 %v1677_v60, %s1339_s21 }
 0x54e   :  { %v1681_v61 = vpop.permute.xlu1 %582  ;;  %v1725_v9 = vpop.permute.xlu0 %590 }
 0x54f   :  { %670 = vrot.lane.b32.xlu1 %v1681_v61, %s1339_s21 }
 0x552   :  { %v1685_v62 = vpop.permute.xlu1 %576  ;;  %v1731_v11 = vpop.permute.xlu0 %584 }
 0x553   :  { %666 = vrot.lane.b32.xlu1 %v1685_v62, %s1339_s21 }
 0x556   :  { %v1689_v63 = vpop.permute.xlu1 %570  ;;  %v1743_v13 = vpop.permute.xlu0 %578 }
 0x557   :  { %662 = vrot.lane.b32.xlu0 %v1689_v63, %s1339_s21 }
 0x55a   :  { %v1693_v0 = vpop.permute.xlu1 %564  ;;  %v1751_v15 = vpop.permute.xlu0 %572 }
 0x55b   :  { %658 = vrot.lane.b32.xlu1 %v1693_v0, %s1339_s21 }
 0x55e   :  { %v1697_v1 = vpop.permute.xlu1 %642  ;;  %v1761_v16 = vpop.permute.xlu0 %566 }
 0x55f   :  { %710 = vrot.lane.b32.xlu1 %v1697_v1, %s1339_s21 }
 0x562   :  { %v1701_v2 = vpop.permute.xlu1 %636  ;;  %v1767_v18 = vpop.permute.xlu0 %644 }
 0x563   :  { %706 = vrot.lane.b32.xlu1 %v1701_v2, %s1339_s21 }
 0x566   :  { %v1705_v3 = vpop.permute.xlu1 %630  ;;  %v1777_v19 = vpop.permute.xlu0 %638 }
 0x567   :  { %702 = vrot.lane.b32.xlu1 %v1705_v3, %s1339_s21 }
 0x56a   :  { %v1711_v5 = vpop.permute.xlu1 %624  ;;  %v1785_v23 = vpop.permute.xlu0 %632 }
 0x56b   :  { %698 = vrot.lane.b32.xlu1 %v1711_v5, %s1339_s21 }
 0x56e   :  { %v1717_v7 = vpop.permute.xlu1 %618  ;;  %v1795_v24 = vpop.permute.xlu0 %626 }
 0x56f   :  { %694 = vrot.lane.b32.xlu1 %v1717_v7, %s1339_s21 }
 0x572   :  { %v1721_v8 = vpop.permute.xlu1 %612  ;;  %v1801_v26 = vpop.permute.xlu0 %620 }
 0x573   :  { %690 = vrot.lane.b32.xlu1 %v1721_v8, %s1339_s21 }
 0x576   :  { %v1727_v10 = vpop.permute.xlu1 %606  ;;  %v1811_v27 = vpop.permute.xlu0 %614 }
 0x577   :  { %2248 = vst [vmem:[#allocation7_spill] sm:$0xff] %v1727_v10  ;;  %686 = vrot.lane.b32.xlu1 %v1727_v10, %s1339_s21 }
 0x57a   :  { %v1733_v12 = vpop.permute.xlu1 %648  ;;  %v1819_v29 = vpop.permute.xlu0 %608 }
 0x57b   :  { %772 = vrot.lane.b32.xlu1 %v1669_v58, %s1340_s22  ;;  %804 = vrot.lane.b32.xlu0 %v1733_v12, %s1340_s22 }
 0x57e   :  { %v1745_v14 = vpop.permute.xlu1 %654  ;;  %v1843_v17 = vpop.permute.xlu0 %656 }
 0x57f   :  { %768 = vrot.lane.b32.xlu1 %v1673_v59, %s1340_s22  ;;  %800 = vrot.lane.b32.xlu0 %v1697_v1, %s1340_s22  ;;  %2249 = vst [vmem:[#allocation8_spill] sm:$0xff] %v1745_v14  ;;  %2252 = vst [vmem:[#allocation11_spill] sm:$0xff] %v1843_v17 }
 0x582   :  { %v1779_v21 = vpop.permute.xlu1 %650  ;;  %v1851_v35 = vpop.permute.xlu0 %746 }
 0x583   :  { %808 = vrot.lane.b32.xlu1 %v1745_v14, %s1340_s22  ;;  %796 = vrot.lane.b32.xlu0 %v1701_v2, %s1340_s22 }
 0x587   :  { %764 = vrot.lane.b32.xlu1 %v1677_v60, %s1340_s22  ;;  %792 = vrot.lane.b32.xlu0 %v1705_v3, %s1340_s22 }
 0x58b   :  { %760 = vrot.lane.b32.xlu1 %v1681_v61, %s1340_s22  ;;  %788 = vrot.lane.b32.xlu0 %v1711_v5, %s1340_s22 }
 0x58f   :  { %756 = vrot.lane.b32.xlu1 %v1685_v62, %s1340_s22  ;;  %784 = vrot.lane.b32.xlu0 %v1717_v7, %s1340_s22 }
 0x593   :  { %752 = vrot.lane.b32.xlu1 %v1689_v63, %s1340_s22  ;;  %780 = vrot.lane.b32.xlu0 %v1721_v8, %s1340_s22 }
 0x597   :  { %748 = vrot.lane.b32.xlu1 %v1693_v0, %s1340_s22  ;;  %684 = vrot.lane.b32.xlu0 %v1709_v4, %s1339_s21 }
 0x59b   :  { %806 = vrot.lane.b32.xlu1 %v1779_v21, %s1340_s22  ;;  %680 = vrot.lane.b32.xlu0 %v1715_v6, %s1339_s21 }
 0x59f   :  { %676 = vrot.lane.b32.xlu0 %v1725_v9, %s1339_s21  ;;  %802 = vrot.lane.b32.xlu1 %v1767_v18, %s1340_s22 }
 0x5a3   :  { %672 = vrot.lane.b32.xlu0 %v1731_v11, %s1339_s21  ;;  %798 = vrot.lane.b32.xlu1 %v1777_v19, %s1340_s22 }
 0x5a7   :  { %668 = vrot.lane.b32.xlu0 %v1743_v13, %s1339_s21  ;;  %794 = vrot.lane.b32.xlu1 %v1785_v23, %s1340_s22 }
 0x5ab   :  { %664 = vrot.lane.b32.xlu0 %v1751_v15, %s1339_s21  ;;  %790 = vrot.lane.b32.xlu1 %v1795_v24, %s1340_s22 }
 0x5af   :  { %660 = vrot.lane.b32.xlu0 %v1761_v16, %s1339_s21  ;;  %786 = vrot.lane.b32.xlu1 %v1801_v26, %s1340_s22 }
 0x5b3   :  { %712 = vrot.lane.b32.xlu0 %v1767_v18, %s1339_s21  ;;  %782 = vrot.lane.b32.xlu1 %v1811_v27, %s1340_s22 }
 0x5b5   :  { %v1817_v28 = vpop.permute.xlu1 %682 }
 0x5b7   :  { %708 = vrot.lane.b32.xlu0 %v1777_v19, %s1339_s21  ;;  %778 = vrot.lane.b32.xlu1 %v1819_v29, %s1340_s22 }
 0x5b9   :  { %v1825_v30 = vpop.permute.xlu1 %678 }
 0x5bb   :  { %704 = vrot.lane.b32.xlu0 %v1785_v23, %s1339_s21  ;;  %836 = vrot.lane.b32.xlu1 %v1817_v28, %s1340_s22 }
 0x5bd   :  { %v1831_v31 = vpop.permute.xlu1 %674 }
 0x5be   :  { %2250 = vst [vmem:[#allocation9_spill] sm:$0xff] %v1831_v31 }
 0x5bf   :  { %700 = vrot.lane.b32.xlu0 %v1795_v24, %s1339_s21  ;;  %832 = vrot.lane.b32.xlu1 %v1825_v30, %s1340_s22 }
 0x5c1   :  { %v1837_v32 = vpop.permute.xlu1 %670 }
 0x5c2   :  { %2251 = vst [vmem:[#allocation10_spill] sm:$0xff] %v1837_v32 }
 0x5c3   :  { %696 = vrot.lane.b32.xlu0 %v1801_v26, %s1339_s21  ;;  %828 = vrot.lane.b32.xlu1 %v1831_v31, %s1340_s22 }
 0x5c5   :  { %v1849_v33 = vpop.permute.xlu1 %666 }
 0x5c6   :  { %2253 = vst [vmem:[#allocation12_spill] sm:$0xff] %v1849_v33 }
 0x5c7   :  { %692 = vrot.lane.b32.xlu0 %v1811_v27, %s1339_s21  ;;  %824 = vrot.lane.b32.xlu1 %v1837_v32, %s1340_s22 }
 0x5c9   :  { %v1859_v36 = vpop.permute.xlu0 %662 }
 0x5ca   :  { %2255 = vst [vmem:[#allocation14_spill] sm:$0xff] %v1859_v36 }
 0x5cb   :  { %820 = vrot.lane.b32.xlu1 %v1849_v33, %s1340_s22  ;;  %688 = vrot.lane.b32.xlu0 %v1819_v29, %s1339_s21 }
 0x5cd   :  { %v1857_v25 = vpop.permute.xlu1 %658 }
 0x5ce   :  { %2254 = vst [vmem:[#allocation13_spill] sm:$0xff] %v1857_v25 }
 0x5cf   :  { %774 = vrot.lane.b32.xlu0 %v1709_v4, %s1340_s22  ;;  %816 = vrot.lane.b32.xlu1 %v1859_v36, %s1340_s22 }
 0x5d1   :  { %v1865_v20 = vpop.permute.xlu1 %710 }
 0x5d2   :  { %2256 = vst [vmem:[#allocation15_spill] sm:$0xff] %v1865_v20 }
 0x5d3   :  { %770 = vrot.lane.b32.xlu0 %v1715_v6, %s1340_s22  ;;  %812 = vrot.lane.b32.xlu1 %v1857_v25, %s1340_s22 }
 0x5d5   :  { %v1871_v37 = vpop.permute.xlu1 %706 }
 0x5d6   :  { %2257 = vst [vmem:[#allocation16_spill] sm:$0xff] %v1871_v37 }
 0x5d7   :  { %810 = vrot.lane.b32.xlu0 %v1843_v17, %s1340_s22  ;;  %864 = vrot.lane.b32.xlu1 %v1865_v20, %s1340_s22 }
 0x5d9   :  { %v1877_v38 = vpop.permute.xlu1 %702 }
 0x5da   :  { %2258 = vst [vmem:[#allocation17_spill] sm:$0xff] %v1877_v38 }
 0x5db   :  { %766 = vrot.lane.b32.xlu0 %v1725_v9, %s1340_s22  ;;  %860 = vrot.lane.b32.xlu1 %v1871_v37, %s1340_s22  ;;  %v1000_v37 = vlaneseq }
 0x5dd   :  { %v1883_v22 = vpop.permute.xlu1 %698  ;;  %v1957_v14 = vshrl.u32 %v1000_v37, 7 }
 0x5de   :  { %2259 = vst [vmem:[#allocation18_spill] sm:$0xff] %v1883_v22 }
 0x5df   :  { %762 = vrot.lane.b32.xlu0 %v1731_v11, %s1340_s22  ;;  %856 = vrot.lane.b32.xlu1 %v1877_v38, %s1340_s22 }
 0x5e1   :  { %v1889_v39 = vpop.permute.xlu1 %694 }
 0x5e2   :  { %2260 = vst [vmem:[#allocation19_spill] sm:$0xff] %v1889_v39 }
 0x5e3   :  { %758 = vrot.lane.b32.xlu0 %v1743_v13, %s1340_s22  ;;  %852 = vrot.lane.b32.xlu1 %v1883_v22, %s1340_s22 }
 0x5e5   :  { %v1895_v40 = vpop.permute.xlu1 %690 }
 0x5e6   :  { %2261 = vst [vmem:[#allocation20_spill] sm:$0xff] %v1895_v40 }
 0x5e7   :  { %754 = vrot.lane.b32.xlu0 %v1751_v15, %s1340_s22  ;;  %848 = vrot.lane.b32.xlu1 %v1889_v39, %s1340_s22 }
 0x5e9   :  { %v1901_v41 = vpop.permute.xlu1 %686 }
 0x5ea   :  { %2262 = vst [vmem:[#allocation21_spill] sm:$0xff] %v1901_v41 }
 0x5eb   :  { %750 = vrot.lane.b32.xlu0 %v1761_v16, %s1340_s22  ;;  %744 = vrot.lane.b32.xlu1 %v1621_v54, %s1340_s22 }
 0x5ed   :  { %v1907_v42 = vpop.permute.xlu1 %772  ;;  %v1909_v43 = vpop.permute.xlu0 %804 }
 0x5ef   :  { %844 = vrot.lane.b32.xlu1 %v1895_v40, %s1340_s22 }
 0x5f1   :  { %v1913_v44 = vpop.permute.xlu1 %768  ;;  %v1915_v45 = vpop.permute.xlu0 %800 }
 0x5f3   :  { %840 = vrot.lane.b32.xlu1 %v1901_v41, %s1340_s22 }
 0x5f5   :  { %v1919_v46 = vpop.permute.xlu1 %808  ;;  %v1921_v47 = vpop.permute.xlu0 %796 }
 0x5f6   :  { %2263 = vst [vmem:[#allocation22_spill] sm:$0xff] %v1919_v46  ;;  %v1011_v46 = vsub.s32 1, %v1957_v14 }
 0x5f9   :  { %v1923_v48 = vpop.permute.xlu1 %764  ;;  %v1925_v49 = vpop.permute.xlu0 %792 }
 0x5fd   :  { %v1927_v50 = vpop.permute.xlu1 %760  ;;  %v1929_v51 = vpop.permute.xlu0 %788 }
 0x601   :  { %v1931_v52 = vpop.permute.xlu1 %756  ;;  %v1933_v53 = vpop.permute.xlu0 %784 }
 0x605   :  { %v1935_v55 = vpop.permute.xlu1 %752  ;;  %v1937_v56 = vpop.permute.xlu0 %780 }
 0x609   :  { %v1939_v34 = vpop.permute.xlu1 %748  ;;  %v1941_v41 = vpop.permute.xlu0 %684 }
 0x60a   :  { %838 = vrot.lane.b32.xlu0 %v1941_v41, %s1340_s22 }
 0x60d   :  { %v807_v40 = vpop.permute.xlu1 %806  ;;  %v1945_v39 = vpop.permute.xlu0 %680 }
 0x60e   :  { %834 = vrot.lane.b32.xlu0 %v1945_v39, %s1340_s22  ;;  %v962_v22 = vsel %vm930_vm12, %v1779_v21, %v807_v40  ;;  %v1965_v21 = vld [vmem:[%s2216_s5] sm:$0xf]  ;;  %s1341_s5 = smov 94  }
 0x60f   :  { %1212 = vmatprep.subr.mxu1 %v962_v22  ;;  %v1012_v40 = vrot.slane %v1965_v21, %v1011_v46 }
 0x611   :  { %v1951_v38 = vpop.permute.xlu0 %676  ;;  %1091 = vmatprep.mubr.f32.mxu1 %v1012_v40  ;;  %v803_v17 = vpop.permute.xlu1 %802 }
 0x612   :  { %830 = vrot.lane.b32.xlu0 %v1951_v38, %s1340_s22 }
 0x615   :  { %v1955_v20 = vpop.permute.xlu0 %672  ;;  %v799_v40 = vpop.permute.xlu1 %798 }
 0x616   :  { %2264 = vst [vmem:[#allocation23_spill] sm:$0xff] %v1955_v20  ;;  %826 = vrot.lane.b32.xlu0 %v1955_v20, %s1340_s22 }
 0x619   :  { %v1967_v22 = vpop.permute.xlu0 %668 }
 0x61a   :  { %2265 = vst [vmem:[#allocation24_spill] sm:$0xff] %v1967_v22  ;;  %822 = vrot.lane.b32.xlu0 %v1967_v22, %s1340_s22  ;;  %v1015_v22 = vsub.s32 2, %v1957_v14 }
 0x61d   :  { %v1972_v37 = vpop.permute.xlu0 %664 }
 0x61e   :  { %2266 = vst [vmem:[#allocation25_spill] sm:$0xff] %v1972_v37  ;;  %818 = vrot.lane.b32.xlu0 %v1972_v37, %s1340_s22  ;;  %v795_v37 = vpop.permute.xlu1 %794 }
 0x621   :  { %v1976_v54 = vpop.permute.xlu0 %660 }
 0x622   :  { %2267 = vst [vmem:[#allocation26_spill] sm:$0xff] %v1976_v54  ;;  %814 = vrot.lane.b32.xlu0 %v1976_v54, %s1340_s22  ;;  %v1019_v54 = vsub.s32 3, %v1957_v14  ;;  %v791_v32 = vpop.permute.xlu1 %790 }
 0x625   :  { %v1980_v25 = vpop.permute.xlu0 %712 }
 0x626   :  { %2268 = vst [vmem:[#allocation27_spill] sm:$0xff] %v1980_v25  ;;  %776 = vrot.lane.b32.xlu0 %v1727_v10, %s1340_s22 }
 0x629   :  { %v1984_v46 = vpop.permute.xlu0 %708 }
 0x62a   :  { %2269 = vst [vmem:[#allocation28_spill] sm:$0xff] %v1984_v46  ;;  %866 = vrot.lane.b32.xlu0 %v1980_v25, %s1340_s22  ;;  %v1020_v25 = vrot.slane %v1965_v21, %v1019_v54 }
 0x62c   :  { %1204 = vmatprep.mubr.msk.f32.mxu0 %vm1024_vm13, %v1020_v25  ;;  %v961_v25 = vsel %vm930_vm12, %v1733_v12, %v1909_v43  ;;  %v959_v12 = vsel %vm930_vm12, %v1697_v1, %v1915_v45  ;;  %v957_v1 = vsel %vm930_vm12, %v1701_v2, %v1921_v47  ;;  %v939_v2 = vsel %vm930_vm12, %v1681_v61, %v1927_v50 }
 0x62d   :  { %v1988_v36 = vpop.permute.xlu0 %704  ;;  %v937_v61 = vsel %vm930_vm12, %v1685_v62, %v1931_v52  ;;  %v935_v62 = vsel %vm930_vm12, %v1689_v63, %v1935_v55 }
 0x62e   :  { %2270 = vst [vmem:[#allocation29_spill] sm:$0xff] %v1988_v36  ;;  %862 = vrot.lane.b32.xlu0 %v1984_v46, %s1340_s22  ;;  %v2004_v46 = vrot.slane %v1965_v21, %v1015_v22 }
 0x630   :  { %2273 = vst [vmem:[#allocation32_spill] sm:$0xff] %v2004_v46  ;;  %v994_v46 = vld [vmem:[#allocation2] sm:$0x1] }
 0x631   :  { %v1992_v33 = vpop.permute.xlu0 %700 }
 0x632   :  { %2271 = vst [vmem:[#allocation30_spill] sm:$0xff] %v1992_v33  ;;  %858 = vrot.lane.b32.xlu0 %v1988_v36, %s1340_s22  ;;  %v787_v36 = vpop.permute.xlu1 %786 }
 0x635   :  { %v1997_v10 = vpop.permute.xlu0 %696 }
 0x636   :  { %2272 = vst [vmem:[#allocation31_spill] sm:$0xff] %v1997_v10  ;;  %854 = vrot.lane.b32.xlu0 %v1992_v33, %s1340_s22  ;;  %v783_v22 = vpop.permute.xlu1 %782 }
 0x639   :  { %v2006_v20 = vpop.permute.xlu0 %692 }
 0x63a   :  { %2274 = vst [vmem:[#allocation33_spill] sm:$0xff] %v2006_v20  ;;  %850 = vrot.lane.b32.xlu0 %v1997_v10, %s1340_s22  ;;  %v945_v10 = vsel %vm930_vm12, %v1669_v58, %v1907_v42  ;;  %v943_v58 = vsel %vm930_vm12, %v1673_v59, %v1913_v44  ;;  %v941_v59 = vsel %vm930_vm12, %v1677_v60, %v1923_v48 }
 0x63b   :  { %v952_v48 = vsel %vm930_vm12, %v1801_v26, %v787_v36  ;;  %v950_v26 = vsel %vm930_vm12, %v1811_v27, %v783_v22  ;;  %v949_v36 = vsel %vm930_vm12, %v1721_v8, %v1937_v56 }
 0x63d   :  { %v2010_v31 = vpop.permute.xlu0 %688 }
 0x63e   :  { %846 = vrot.lane.b32.xlu0 %v2006_v20, %s1340_s22 }
 0x641   :  { %v775_v33 = vpop.permute.xlu0 %774 }
 0x642   :  { %v946_v54 = vsel %vm930_vm12, %v1709_v4, %v775_v33  ;;  %842 = vrot.lane.b32.xlu0 %v2010_v31, %s1340_s22  ;;  %v960_v4 = vsel %vm930_vm12, %v1767_v18, %v803_v17  ;;  %v958_v18 = vsel %vm930_vm12, %v1777_v19, %v799_v40  ;;  %v956_v19 = vsel %vm930_vm12, %v1785_v23, %v795_v37  ;;  %v2276_v37 = vld [vmem:[#allocation9_spill] sm:$0xff] }
 0x643   :  { %1213 = vmatpush3.msra.mxu1 %v946_v54  ;;  %v954_v23 = vsel %vm930_vm12, %v1795_v24, %v791_v32  ;;  %v2278_v54 = vld [vmem:[#allocation10_spill] sm:$0xff] }
 0x644   :  { %1214 = vmatprep.subr.mxu1 %v961_v25 }
 0x645   :  { %1215 = vmatpush3.msra.mxu1 %v945_v10  ;;  %v771_v20 = vpop.permute.xlu0 %770  ;;  %v779_v10 = vpop.permute.xlu1 %778 }
 0x646   :  { %v944_v33 = vsel %vm930_vm12, %v1715_v6, %v771_v20  ;;  %997 = vperm.xlu0 %1284, %v994_v46   ;;  %1216 = vmatprep.subr.mxu1 %v960_v4  ;;  %v2279_v4 = vld [vmem:[#allocation24_spill] sm:$0xff] }
 0x647   :  { %1217 = vmatpush3.msra.mxu1 %v944_v33 }
 0x648   :  { %1218 = vmatprep.subr.mxu1 %v959_v12  ;;  %v2280_v12 = vld [vmem:[#allocation12_spill] sm:$0xff] }
 0x649   :  { %1219 = vmatpush3.msra.mxu1 %v943_v58  ;;  %v2034_v42 = vpop.permute.xlu0 %810  ;;  %v837_v20 = vpop.permute.xlu1 %836 }
 0x64a   :  { %1220 = vmatprep.subr.mxu1 %v958_v18 }
 0x64d   :  { %v767_v6 = vpop.permute.xlu0 %766  ;;  %v833_v60 = vpop.permute.xlu1 %832 }
 0x64e   :  { %v942_v17 = vsel %vm930_vm12, %v1725_v9, %v767_v6  ;;  %v955_v9 = vsel %vm930_vm12, %v1705_v3, %v1925_v49  ;;  %v953_v3 = vsel %vm930_vm12, %v1711_v5, %v1929_v51  ;;  %v951_v5 = vsel %vm930_vm12, %v1717_v7, %v1933_v53  ;;  %v2281_v6 = vld [vmem:[#allocation25_spill] sm:$0xff] }
 0x64f   :  { %1221 = vmatpush3.msra.mxu1 %v942_v17  ;;  %v933_v7 = vsel %vm930_vm12, %v1693_v0, %v1939_v34  ;;  %v948_v49 = vsel %vm930_vm12, %v1819_v29, %v779_v10  ;;  %v977_v0 = vsel %vm930_vm12, %v1817_v28, %v837_v20  ;;  %v2275_v53 = vmov 0.0   ;;  %v2282_v20 = vld [vmem:[#allocation14_spill] sm:$0xff] }
 0x650   :  { %1222 = vmatprep.subr.mxu1 %v957_v1  ;;  %v975_v55 = vsel %vm930_vm12, %v1825_v30, %v833_v60  ;;  %v2277_v30 = vld [vmem:[#allocation23_spill] sm:$0xff] }
 0x651   :  { %1223 = vmatpush3.msra.mxu1 %v941_v59  ;;  %v763_v43 = vpop.permute.xlu0 %762 }
 0x652   :  { %v940_v44 = vsel %vm930_vm12, %v1731_v11, %v763_v43  ;;  %1224 = vmatprep.subr.mxu1 %v956_v19  ;;  %v1002_v43 = vsub.s32 0, %v1957_v14  ;;  %v2283_v19 = vld [vmem:[#allocation26_spill] sm:$0xff] }
 0x653   :  { %1225 = vmatpush3.msra.mxu1 %v940_v44 }
 0x654   :  { %1226 = vmatprep.subr.mxu1 %v955_v9  ;;  %v2284_v9 = vld [vmem:[#allocation13_spill] sm:$0xff] }
 0x655   :  { %1227 = vmatpush3.msra.mxu1 %v939_v2  ;;  %v759_v45 = vpop.permute.xlu0 %758 }
 0x656   :  { %v938_v11 = vsel %vm930_vm12, %v1743_v13, %v759_v45  ;;  %1228 = vmatprep.subr.mxu1 %v954_v23  ;;  %v829_v13 = vpop.permute.xlu1 %828  ;;  %v1008_v23 = vrot.slane %v1965_v21, %v1002_v43 }
 0x657   :  { %1229 = vmatpush3.msra.mxu1 %v938_v11  ;;  %v2285_v11 = vld [vmem:[#allocation11_spill] sm:$0xff] }
 0x658   :  { %1230 = vmatprep.subr.mxu1 %v953_v3  ;;  %v964_v3 = vsel %vm930_vm12, %v2285_v11, %v2034_v42  ;;  %v2290_v42 = vld [vmem:[#allocation27_spill] sm:$0xff] }
 0x659   :  { %1231 = vmatpush3.msra.mxu1 %v937_v61  ;;  %v755_v47 = vpop.permute.xlu0 %754  ;;  %v2286_v61 = vld [vmem:[#allocation7_spill] sm:$0xff] }
 0x65a   :  { %v936_v24 = vsel %vm930_vm12, %v1751_v15, %v755_v47  ;;  %1232 = vmatprep.subr.mxu1 %v952_v48  ;;  %v825_v63 = vpop.permute.xlu1 %824  ;;  %v2287_v48 = vld [vmem:[#allocation6_spill] sm:$0xff] }
 0x65b   :  { %1233 = vmatpush3.msra.mxu1 %v936_v24  ;;  %v971_v22 = vsel %vm930_vm12, %v2278_v54, %v825_v63  ;;  %v2301_v54 = vld [vmem:[#allocation20_spill] sm:$0xff] }
 0x65c   :  { %1234 = vmatprep.subr.mxu1 %v951_v5  ;;  %v2289_v5 = vld [vmem:[#allocation8_spill] sm:$0xff] }
 0x65d   :  { %1235 = vmatpush3.msra.mxu1 %v935_v62  ;;  %v751_v32 = vpop.permute.xlu0 %750 }
 0x65e   :  { %v934_v15 = vsel %vm930_vm12, %v1761_v16, %v751_v32  ;;  %1236 = vmatprep.subr.mxu1 %v950_v26  ;;  %v932_v16 = vsel %vm930_vm12, %v1624_v57, %v1851_v35  ;;  %v821_v27 = vpop.permute.xlu1 %820  ;;  %v2291_v26 = vld [vmem:[#allocation15_spill] sm:$0xff] }
 0x65f   :  { %1237 = vmatpush3.msra.mxu1 %v934_v15  ;;  %v969_v58 = vsel %vm930_vm12, %v2280_v12, %v821_v27 }
 0x660   :  { %1238 = vmatprep.subr.mxu1 %v949_v36 }
 0x661   :  { %1239 = vmatpush3.msra.mxu1 %v933_v7  ;;  %v2292_v7 = vld [vmem:[#allocation28_spill] sm:$0xff] }
 0x662   :  { %1240 = vmatprep.subr.mxu1 %v948_v49  ;;  %v817_v50 = vpop.permute.xlu1 %816  ;;  %v2293_v49 = vld [vmem:[#allocation16_spill] sm:$0xff] }
 0x663   :  { %1241 = vmatpush3.msra.mxu1 %v932_v16  ;;  %v967_v1 = vsel %vm930_vm12, %v2282_v20, %v817_v50  ;;  %v2294_v50 = vld [vmem:[#allocation29_spill] sm:$0xff] }
 0x666   :  { %v813_v51 = vpop.permute.xlu1 %812 }
 0x667   :  { %v965_v2 = vsel %vm930_vm12, %v2284_v9, %v813_v51 }
 0x66a   :  { %v2091_v8 = vpop.permute.xlu1 %864 }
 0x66b   :  { %v991_v15 = vsel %vm930_vm12, %v2291_v26, %v2091_v8  ;;  %v2295_v8 = vld [vmem:[#allocation17_spill] sm:$0xff] }
 0x66e   :  { %v2097_v29 = vpop.permute.xlu1 %860 }
 0x66f   :  { %v989_v16 = vsel %vm930_vm12, %v2293_v49, %v2097_v29 }
 0x672   :  { %v2106_v28 = vpop.permute.xlu1 %856 }
 0x67c   :  { %v839_v52 = vpop.permute.xlu0 %838 }
 0x67d   :  { %v978_v34 = vsel %vm930_vm12, %v1941_v41, %v839_v52  ;;  %v987_v52 = vsel %vm930_vm12, %v2295_v8, %v2106_v28 }
 0x67e   :  { %1098 = vmatpush1.msra.mxu0 %v978_v34 }
 0x67f   :  { %1099 = vmatprep.subr.mxu0 %v2275_v53 }
 0x680   :  { %1100 = vmatpush1.msra.mxu0 %v977_v0  ;;  %v835_v57 = vpop.permute.xlu0 %834  ;;  %v2296_v0 = vld [vmem:[#allocation30_spill] sm:$0xff] }
 0x681   :  { %v976_v35 = vsel %vm930_vm12, %v1945_v39, %v835_v57  ;;  %1101 = vmatprep.subr.mxu0 %v2275_v53  ;;  %v973_v39 = vsel %vm930_vm12, %v2276_v37, %v829_v13  ;;  %v2288_v13 = vld [vmem:[#allocation22_spill] sm:$0xff]  ;;  %v2299_v37 = vld [vmem:[#allocation19_spill] sm:$0xff] }
 0x682   :  { %1102 = vmatpush1.msra.mxu0 %v976_v35  ;;  %v963_v62 = vsel %vm930_vm12, %v2289_v5, %v2288_v13  ;;  %v2297_v57 = vld [vmem:[#allocation18_spill] sm:$0xff] }
 0x683   :  { %1103 = vmatprep.subr.mxu0 %v2275_v53 }
 0x684   :  { %1104 = vmatpush1.msra.mxu0 %v975_v55  ;;  %v831_v41 = vpop.permute.xlu0 %830 }
 0x685   :  { %v974_v56 = vsel %vm930_vm12, %v1951_v38, %v831_v41  ;;  %1105 = vmatprep.subr.mxu0 %v2275_v53  ;;  %v2119_v38 = vpop.permute.xlu1 %852  ;;  %v2298_v41 = vld [vmem:[#allocation31_spill] sm:$0xff] }
 0x686   :  { %1106 = vmatpush1.msra.mxu0 %v974_v56  ;;  %v985_v35 = vsel %vm930_vm12, %v2297_v57, %v2119_v38 }
 0x687   :  { %1107 = vmatprep.subr.mxu0 %v2275_v53 }
 0x688   :  { %1108 = vmatpush1.msra.mxu0 %v973_v39  ;;  %v827_v46 = vpop.permute.xlu0 %826 }
 0x689   :  { %v972_v40 = vsel %vm930_vm12, %v2277_v30, %v827_v46  ;;  %1109 = vmatprep.subr.mxu0 %v2275_v53  ;;  %v2128_v18 = vpop.permute.xlu1 %848  ;;  %v2300_v30 = vld [vmem:[#allocation33_spill] sm:$0xff] }
 0x68a   :  { %1110 = vmatpush1.msra.mxu0 %v972_v40  ;;  %v983_v39 = vsel %vm930_vm12, %v2299_v37, %v2128_v18 }
 0x68b   :  { %1111 = vmatprep.subr.mxu0 %v2275_v53 }
 0x68c   :  { %1112 = vmatpush1.msra.mxu0 %v971_v22  ;;  %v823_v25 = vpop.permute.xlu0 %822 }
 0x68d   :  { %v970_v33 = vsel %vm930_vm12, %v2279_v4, %v823_v25  ;;  %1113 = vmatprep.subr.mxu0 %v2275_v53  ;;  %v745_v60 = vpop.permute.xlu1 %744 }
 0x68e   :  { %1114 = vmatpush1.msra.mxu0 %v970_v33  ;;  %v931_v24 = vsel %vm930_vm12, %v2287_v48, %v745_v60  ;;  %v2302_v33 = vld [vmem:[#allocation21_spill] sm:$0xff] }
 0x68f   :  { %1115 = vmatprep.subr.mxu0 %v2275_v53 }
 0x690   :  { %1116 = vmatpush1.msra.mxu0 %v969_v58  ;;  %v819_v10 = vpop.permute.xlu0 %818  ;;  %v2303_v58 = vld [vmem:[#allocation32_spill] sm:$0xff] }
 0x691   :  { %v968_v17 = vsel %vm930_vm12, %v2281_v6, %v819_v10  ;;  %1117 = vmatprep.subr.mxu0 %v2275_v53  ;;  %v845_v56 = vpop.permute.xlu1 %844 }
 0x692   :  { %1118 = vmatpush1.msra.mxu0 %v968_v17  ;;  %v981_v22 = vsel %vm930_vm12, %v2301_v54, %v845_v56 }
 0x693   :  { %1119 = vmatprep.subr.mxu0 %v2275_v53 }
 0x694   :  { %1120 = vmatpush1.msra.mxu0 %v967_v1  ;;  %v815_v59 = vpop.permute.xlu0 %814 }
 0x695   :  { %v966_v44 = vsel %vm930_vm12, %v2283_v19, %v815_v59  ;;  %1121 = vmatprep.subr.mxu0 %v2275_v53  ;;  %v841_v38 = vpop.permute.xlu1 %840 }
 0x696   :  { %1122 = vmatpush1.msra.mxu0 %v966_v44  ;;  %v979_v12 = vsel %vm930_vm12, %v2302_v33, %v841_v38 }
 0x697   :  { %1123 = vmatprep.subr.mxu0 %v2275_v53 }
 0x698   :  { %1124 = vmatpush1.msra.mxu0 %v965_v2  ;;  %v777_v45 = vpop.permute.xlu0 %776 }
 0x699   :  { %1125 = vmatprep.subr.mxu0 %v2275_v53  ;;  %v947_v47 = vsel %vm930_vm12, %v2286_v61, %v777_v45 }
 0x69a   :  { %1242 = vmatprep.subr.mxu1 %v947_v47  ;;  %1126 = vmatpush1.msra.mxu0 %v964_v3 }
 0x69b   :  { %1243 = vmatpush3.msra.mxu1 %v931_v24  ;;  %1127 = vmatprep.subr.mxu0 %v2275_v53 }
 0x69c   :  { %1092 = vmatmul.mubr.f32.vlgmr.msra.gmra.mxu1 %v1008_v23  ;;  %1128 = vmatpush1.msra.mxu0 %v963_v62  ;;  %v867_v21 = vpop.permute.xlu0 %866 }
 0x69d   :  { %v992_v32 = vsel %vm930_vm12, %v2290_v42, %v867_v21  ;;  %1133 = vmatprep.subr.mxu0 %v2275_v53 }
 0x69e   :  { %1134 = vmatpush2.msra.mxu0 %v992_v32 }
 0x69f   :  { %1135 = vmatprep.subr.mxu0 %v2275_v53 }
 0x6a0   :  { %1136 = vmatpush2.msra.mxu0 %v991_v15  ;;  %v863_v36 = vpop.permute.xlu0 %862 }
 0x6a1   :  { %v990_v63 = vsel %vm930_vm12, %v2292_v7, %v863_v36  ;;  %1137 = vmatprep.subr.mxu0 %v2275_v53 }
 0x6a2   :  { %1138 = vmatpush2.msra.mxu0 %v990_v63 }
 0x6a3   :  { %1139 = vmatprep.subr.mxu0 %v2275_v53 }
 0x6a4   :  { %1140 = vmatpush2.msra.mxu0 %v989_v16  ;;  %v859_v27 = vpop.permute.xlu0 %858 }
 0x6a5   :  { %v988_v51 = vsel %vm930_vm12, %v2294_v50, %v859_v27  ;;  %1141 = vmatprep.subr.mxu0 %v2275_v53 }
 0x6a6   :  { %1142 = vmatpush2.msra.mxu0 %v988_v51 }
 0x6a7   :  { %1143 = vmatprep.subr.mxu0 %v2275_v53 }
 0x6a8   :  { %1144 = vmatpush2.msra.mxu0 %v987_v52  ;;  %v855_v34 = vpop.permute.xlu0 %854 }
 0x6a9   :  { %v986_v29 = vsel %vm930_vm12, %v2296_v0, %v855_v34  ;;  %1145 = vmatprep.subr.mxu0 %v2275_v53 }
 0x6aa   :  { %1146 = vmatpush2.msra.mxu0 %v986_v29 }
 0x6ab   :  { %1147 = vmatprep.subr.mxu0 %v2275_v53 }
 0x6ac   :  { %1148 = vmatpush2.msra.mxu0 %v985_v35  ;;  %v851_v55 = vpop.permute.xlu0 %850 }
 0x6ad   :  { %v984_v28 = vsel %vm930_vm12, %v2298_v41, %v851_v55  ;;  %1149 = vmatprep.subr.mxu0 %v2275_v53 }
 0x6ae   :  { %1150 = vmatpush2.msra.mxu0 %v984_v28 }
 0x6af   :  { %1151 = vmatprep.subr.mxu0 %v2275_v53 }
 0x6b0   :  { %1152 = vmatpush2.msra.mxu0 %v983_v39  ;;  %v847_v46 = vpop.permute.xlu0 %846 }
 0x6b1   :  { %v982_v40 = vsel %vm930_vm12, %v2300_v30, %v847_v46  ;;  %1153 = vmatprep.subr.mxu0 %v2275_v53 }
 0x6b2   :  { %1154 = vmatpush2.msra.mxu0 %v982_v40 }
 0x6b3   :  { %1155 = vmatprep.subr.mxu0 %v2275_v53 }
 0x6b4   :  { %1156 = vmatpush2.msra.mxu0 %v981_v22  ;;  %v843_v25 = vpop.permute.xlu0 %842 }
 0x6b5   :  { %v980_v4 = vsel %vm930_vm12, %v2010_v31, %v843_v25  ;;  %1157 = vmatprep.subr.mxu0 %v2275_v53 }
 0x6b6   :  { %1158 = vmatpush2.msra.mxu0 %v980_v4 }
 0x6b7   :  { %1159 = vmatprep.subr.mxu0 %v2275_v53 }
 0x6b8   :  { %1160 = vmatpush2.msra.mxu0 %v979_v12 }
 0x6b9   :  { %1162 = vmatmul.mubr.f32.vlgmr.msra.gmra.mxu0 %v2303_v58 }
 0x6c1   :  { %v998_v6 = vpop.permute.xlu0 %997 }
 0x6c2   :  { %v1003_v20 = vrot.slane %v998_v6, %v1002_v43 }
 0x75c   :  { %v1244_v10 = vpop.f32.mrf.mxu1 }
 0x75e   :  { %v1245_v18 = vpop.f32.mrf.mxu1 }
 0x75f   :  { %v1246_v17 = vadd.f32 %v1245_v18, %v1244_v10 }
 0x761   :  { %v1094_v1 = vadd.f32 %v1246_v17, %v1003_v20 }
 0x779   :  { %v1163_v31 = vpop.f32.mrf.mxu0 }
 0x77a   :  { %v1164_v59 = vadd.f32 %v1163_v31, %v1094_v1 }
 0x77b   :  { %v1165_v19 = vpop.f32.mrf.mxu0 }
 0x77c   :  { %v1168_v44 = vrot.slane %v1164_v59, 7 }
 0x77e   :  { %1169 = vrot.lane.b32.xlu1 %v1168_v44, %s1341_s5 }
 0x7f0   :  { %v1170_v53 = vpop.permute.xlu1 %1169 }
 0x7f1   :  { %v1173_v9 = vsel %vm1172_vm14, %v1164_v59, %v1170_v53 }
 0x7f2   :  { %1175 = vst.msk [vmem:[#allocation3] sm:$0x3] %vm1174_vm15, %v1173_v9 }
 0x7f3   :  { %1308 = shalt.err (!%p1305_p4)
}
 0x7f4   :  { %1185 = dma.vmem_to_hbm [thread:$0]  %s1183_s1, 32, %s2218_s7, [#allocation4]  }
 0x7f5   :  { %1317 = dma.done.wait [#allocation4], 32  }
 0x7f6   :  { %1318 = vsyncadd [#allocation4], 4294967264 }
 0x7f7   :  { %1189 = vsyncpa [#allocation4], 1 }

</bundles_post_ra>
